<compile_context>
chip_gen: v7x
topology: tpu7x:2x2x1
jax: 0.10.0
libtpu: 0.0.40
codegen_flags: <defaults>
</compile_context>

<pallas_src>
import functools

import jax
import jax.numpy as jnp
from jax import lax
from jax.experimental import pallas as pl
from jax.experimental.pallas import tpu as pltpu


def _round_up(x, m):
    return ((x + m - 1) // m) * m


def _pick_vmem_limit():
    """Generation-aware scoped-VMEM limit: ~96 MiB on 128 MiB parts, ~48 MiB on 64 MiB parts."""
    cap = None
    try:
        info = pltpu.get_tpu_info()
        cap = getattr(info, "vmem_capacity_bytes", None)
    except Exception:
        cap = None
    if not cap:
        return 48 * 1024 * 1024
    return min(100 * 1024 * 1024, (int(cap) * 3) // 4)


# ----------------------------------------------------------------------------
# Fused kernel: per-edge-tile compute + on-chip gathers + segment accumulation,
# with node MLP / coord update in the finalize phase.
# ----------------------------------------------------------------------------
def _egcl_fused_kernel(
    # inputs ------------------------------------------------------------------
    idx_ref,       # [TILE_E, 2] int32  (row | col); padded edges use sentinel == N
    h_ref,         # [N, F]  f32, resident
    coord_ref,     # [N, 3]  f32, resident
    w1s_ref, w1t_ref,            # [F, H] mxu   edge_mlp L1 (split over the concat)
    w1r_ref, b1_ref,             # [1, H] f32   radial column of L1 + bias
    w2_ref, b2_ref,              # [H, H] mxu / [1, H] f32   edge_mlp L2
    cw1_ref, cb1_ref, cw2t_ref,  # coord_mlp: [H,H] mxu / [1,H] f32 / [1,H] f32
    nw1h_ref, nw1a_ref, nb1_ref, nw2_ref, nb2_ref,  # node_mlp (split)
    # outputs -----------------------------------------------------------------
    h_out_ref,      # [N, O] f32
    coord_out_ref,  # [N, 3] f32
    # scratch -----------------------------------------------------------------
    acc_ref,        # [N, WIDE] f32 : [sum(edge_feat) | sum(trans) | count | 0]
    tsrc_ref,       # [N, WIDE] mxu : [h @ w1_src | coord | 0]
    ttgt_ref,       # [N, WIDE] mxu : [h @ w1_tgt | coord | 0]
    hn_ref,         # [N, H]   f32  : h @ node_w1_h (hoisted out of finalize)
    payload_ref,    # [TILE_E, WIDE] mxu : [edge_feat | trans | 1 | 0]
):
    step = pl.program_id(0)
    n_nodes = h_ref.shape[0]
    tile_e = idx_ref.shape[0]
    hidden = w1s_ref.shape[1]
    mxu = tsrc_ref.dtype
    f32 = jnp.float32

    # ---- init (first edge tile only): resident tables + node-MLP h-term ------
    @pl.when(step == 0)
    def _init():
        acc_ref[...] = jnp.zeros_like(acc_ref)
        payload_ref[...] = jnp.zeros_like(payload_ref)
        tsrc_ref[...] = jnp.zeros_like(tsrc_ref)
        ttgt_ref[...] = jnp.zeros_like(ttgt_ref)
        h_m = h_ref[...].astype(mxu)
        tsrc_ref[:, :hidden] = jnp.dot(
            h_m, w1s_ref[...], preferred_element_type=f32).astype(mxu)
        ttgt_ref[:, :hidden] = jnp.dot(
            h_m, w1t_ref[...], preferred_element_type=f32).astype(mxu)
        # coord packed next to the projected features (4-wide store: whole words)
        coord4 = jnp.concatenate(
            [coord_ref[...], jnp.zeros((n_nodes, 1), f32)], axis=1)
        tsrc_ref[:, hidden:hidden + 4] = coord4.astype(mxu)
        ttgt_ref[:, hidden:hidden + 4] = coord4.astype(mxu)
        # node MLP h-projection hoisted here (independent of the accumulator)
        hn_ref[...] = jnp.dot(h_m, nw1h_ref[...], preferred_element_type=f32)

    # ---- per-tile one-hot (single iota+compare; scatter form is its transpose)
    idx = idx_ref[...]                                           # [TILE_E, 2]
    iota = lax.broadcasted_iota(jnp.int32, (tile_e, n_nodes), 1)
    oh_src = (idx[:, 0:1] == iota).astype(mxu)                   # [TILE_E, N]
    oh_tgt = (idx[:, 1:2] == iota).astype(mxu)                   # [TILE_E, N]

    # ---- fused gathers: one MXU matmul per orientation ------------------------
    g_src = jnp.dot(oh_src, tsrc_ref[...], preferred_element_type=f32)
    g_tgt = jnp.dot(oh_tgt, ttgt_ref[...], preferred_element_type=f32)

    coord_diff = g_src[:, hidden:hidden + 3] - g_tgt[:, hidden:hidden + 3]
    radial = jnp.sum(coord_diff * coord_diff, axis=1, keepdims=True)  # VPU+XLU

    # ---- edge_mlp (concat expressed as split matmuls on pre-projected h) ------
    pre1 = g_src[:, :hidden] + g_tgt[:, :hidden] + radial * w1r_ref[...] + b1_ref[...]
    x = jax.nn.silu(pre1)
    edge_feat = jax.nn.silu(
        jnp.dot(x.astype(mxu), w2_ref[...], preferred_element_type=f32) + b2_ref[...])

    # ---- coord_mlp -> per-edge translation (scale kept off the MXU) -----------
    c = jax.nn.silu(
        jnp.dot(edge_feat.astype(mxu), cw1_ref[...], preferred_element_type=f32)
        + cb1_ref[...])
    scale = jnp.sum(c * cw2t_ref[...], axis=1, keepdims=True)    # [TILE_E, 1]
    trans = coord_diff * scale                                   # [TILE_E, 3] f32

    # ---- merged segment reduction: ONE scatter matmul into lane-aligned acc ---
    payload_ref[:, :hidden] = edge_feat.astype(mxu)
    trans_cnt = jnp.concatenate([trans, jnp.ones((tile_e, 1), f32)], axis=1)
    payload_ref[:, hidden:hidden + 4] = trans_cnt.astype(mxu)

    oh_scat = oh_src.T                                           # [N, TILE_E] via XLU
    acc_ref[...] += jnp.dot(oh_scat, payload_ref[...], preferred_element_type=f32)

    # ---- finalize (last edge tile): node MLP + residual, coord mean update ----
    @pl.when(step == pl.num_programs(0) - 1)
    def _finalize():
        agg = acc_ref[:, :hidden]                                # [N, H]
        trans_sum = acc_ref[:, hidden:hidden + 3]                # [N, 3]
        count = acc_ref[:, hidden + 3:hidden + 4]                # [N, 1]

        pre = (hn_ref[...]
               + jnp.dot(agg.astype(mxu), nw1a_ref[...], preferred_element_type=f32)
               + nb1_ref[...])
        y = jax.nn.silu(pre)
        out = jnp.dot(y.astype(mxu), nw2_ref[...], preferred_element_type=f32) + nb2_ref[...]
        h_out_ref[...] = h_ref[...] + out                        # residual

        coord_out_ref[...] = coord_ref[...] + trans_sum / jnp.maximum(count, 1.0)


# ----------------------------------------------------------------------------
# Wrapper
# ----------------------------------------------------------------------------
@functools.partial(jax.jit, static_argnames=("tile_e", "mxu_dtype"))
def e_gcl_forward(h, row, col, coord, params, tile_e=512, mxu_dtype=jnp.bfloat16):
    """Pallas implementation of E_GCL.forward (edge_attr=None, node_attr=None)."""
    n_nodes, input_nf = h.shape
    n_edges = row.shape[0]
    hidden_nf = params["edge_w1"].shape[1]
    output_nf = params["node_w2"].shape[1]
    wide = _round_up(hidden_nf + 4, 128)     # lane-aligned acc / table / payload width

    # --- pad edges to a multiple of tile_e with a sentinel node index (== N) ---
    num_tiles = pl.cdiv(n_edges, tile_e)
    e_pad = num_tiles * tile_e
    pad = e_pad - n_edges
    row_p = jnp.concatenate(
        [row.astype(jnp.int32), jnp.full((pad,), n_nodes, jnp.int32)])
    col_p = jnp.concatenate(
        [col.astype(jnp.int32), jnp.full((pad,), n_nodes, jnp.int32)])
    edge_idx = jnp.stack([row_p, col_p], axis=1)                 # [E_pad, 2]

    # --- split concatenated weights; cast matmul weights to the MXU dtype ------
    w1 = params["edge_w1"]                                       # [(2F+1), H]
    w1_src = w1[:input_nf].astype(mxu_dtype)
    w1_tgt = w1[input_nf:2 * input_nf].astype(mxu_dtype)
    w1_rad = w1[2 * input_nf:2 * input_nf + 1]                   # [1, H] f32 (VPU)
    nw1 = params["node_w1"]                                      # [(F+H), H]
    nw1_h = nw1[:input_nf].astype(mxu_dtype)
    nw1_a = nw1[input_nf:].astype(mxu_dtype)
    edge_w2 = params["edge_w2"].astype(mxu_dtype)
    coord_w1 = params["coord_w1"].astype(mxu_dtype)
    node_w2 = params["node_w2"].astype(mxu_dtype)

    # --- BlockSpecs -------------------------------------------------------------
    def const_spec(shape):
        return pl.BlockSpec(shape, lambda i: (0, 0))

    in_specs = [
        pl.BlockSpec((tile_e, 2), lambda i: (i, 0)),             # edge_idx
        const_spec((n_nodes, input_nf)),                         # h (resident)
        const_spec((n_nodes, 3)),                                # coord (resident)
        const_spec((input_nf, hidden_nf)),                       # w1_src
        const_spec((input_nf, hidden_nf)),                       # w1_tgt
        const_spec((1, hidden_nf)),                              # w1_rad
        const_spec((1, hidden_nf)),                              # edge_b1
        const_spec((hidden_nf, hidden_nf)),                      # edge_w2
        const_spec((1, hidden_nf)),                              # edge_b2
        const_spec((hidden_nf, hidden_nf)),                      # coord_w1
        const_spec((1, hidden_nf)),                              # coord_b1
        const_spec((1, hidden_nf)),                              # coord_w2t
        const_spec((input_nf, hidden_nf)),                       # node_w1 (h part)
        const_spec((hidden_nf, hidden_nf)),                      # node_w1 (agg part)
        const_spec((1, hidden_nf)),                              # node_b1
        const_spec((hidden_nf, output_nf)),                      # node_w2
        const_spec((1, output_nf)),                              # node_b2
    ]
    out_specs = (
        const_spec((n_nodes, output_nf)),
        const_spec((n_nodes, 3)),
    )

    # --- advisory cost estimate --------------------------------------------------
    flops = int(
        2 * n_nodes * input_nf * hidden_nf * 3                        # step-0 projections
        + int(num_tiles) * (
            2 * tile_e * n_nodes * wide * 2                           # fused gathers
            + 2 * tile_e * hidden_nf * hidden_nf * 2                  # edge L2 + coord L1
            + 2 * n_nodes * tile_e * wide                             # merged scatter
            + 12 * tile_e * hidden_nf)                                # VPU elementwise
        + 2 * n_nodes * hidden_nf * (hidden_nf + output_nf))          # finalize node MLP
    transcendentals = int(int(num_tiles) * 3 * tile_e * hidden_nf + n_nodes * hidden_nf)
    bytes_accessed = int(
        8 * e_pad
        + 4 * n_nodes * (input_nf + 3 + output_nf + 3)
        + 4 * ((2 * input_nf + 1) * hidden_nf
               + 2 * hidden_nf * hidden_nf
               + (input_nf + hidden_nf) * hidden_nf
               + hidden_nf * output_nf
               + 6 * hidden_nf + output_nf))

    h_out, coord_out = pl.pallas_call(
        _egcl_fused_kernel,
        out_shape=(
            jax.ShapeDtypeStruct((n_nodes, output_nf), jnp.float32),
            jax.ShapeDtypeStruct((n_nodes, 3), jnp.float32),
        ),
        grid_spec=pltpu.PrefetchScalarGridSpec(
            num_scalar_prefetch=0,
            grid=(int(num_tiles),),
            in_specs=in_specs,
            out_specs=out_specs,
            scratch_shapes=[
                pltpu.VMEM((n_nodes, wide), jnp.float32),             # acc
                pltpu.VMEM((n_nodes, wide), mxu_dtype),               # T_src
                pltpu.VMEM((n_nodes, wide), mxu_dtype),               # T_tgt
                pltpu.VMEM((n_nodes, hidden_nf), jnp.float32),        # h @ node_w1_h
                pltpu.VMEM((tile_e, wide), mxu_dtype),                # scatter payload
            ],
        ),
        compiler_params=pltpu.CompilerParams(
            # Reduction over edge tiles carries the VMEM accumulator -> arbitrary.
            dimension_semantics=("arbitrary",),
            vmem_limit_bytes=_pick_vmem_limit(),
        ),
        cost_estimate=pl.CostEstimate(
            flops=flops,
            transcendentals=transcendentals,
            bytes_accessed=bytes_accessed,
        ),
    )(
        edge_idx, h, coord,
        w1_src, w1_tgt, w1_rad, params["edge_b1"],
        edge_w2, params["edge_b2"],
        coord_w1, params["coord_b1"], params["coord_w2t"],
        nw1_h, nw1_a, params["node_b1"], node_w2, params["node_b2"],
    )

    # forward returns (h, coord, edge_attr); edge_attr is None here.
    return h_out, coord_out, None


# ----------------------------------------------------------------------------
# Pure-JAX reference (mirrors the PyTorch semantics) for validation
# ----------------------------------------------------------------------------
def e_gcl_reference(h, row, col, coord, params):
    coord_diff = coord[row] - coord[col]
    radial = jnp.sum(coord_diff ** 2, axis=1, keepdims=True)

    inp = jnp.concatenate([h[row], h[col], radial], axis=1)
    x = jax.nn.silu(inp @ params["edge_w1"] + params["edge_b1"])
    edge_feat = jax.nn.silu(x @ params["edge_w2"] + params["edge_b2"])

    c = jax.nn.silu(edge_feat @ params["coord_w1"] + params["coord_b1"])
    scale = c @ params["coord_w2t"].T                     # [E, 1]
    trans = coord_diff * scale

    n = h.shape[0]
    seg_sum = jax.ops.segment_sum(edge_feat, row, num_segments=n)
    trans_sum = jax.ops.segment_sum(trans, row, num_segments=n)
    count = jax.ops.segment_sum(jnp.ones_like(trans), row, num_segments=n)
    coord_out = coord + trans_sum / jnp.maximum(count, 1.0)

    agg = jnp.concatenate([h, seg_sum], axis=1)
    y = jax.nn.silu(agg @ params["node_w1"] + params["node_b1"])
    h_out = h + (y @ params["node_w2"] + params["node_b2"])
    return h_out, coord_out


# ----------------------------------------------------------------------------
# Deterministic parameter construction (shapes from E_GCL.__init__)
# ----------------------------------------------------------------------------
def make_params(key, input_nf, output_nf, hidden_nf):
    ks = jax.random.split(key, 11)
    s = 0.1  # small scale for numerically tame SiLU stacks
    return {
        # edge_mlp: Linear(2F+1, H), Linear(H, H)   (stored as [in, out])
        "edge_w1": s * jax.random.normal(ks[0], (2 * input_nf + 1, hidden_nf), jnp.float32),
        "edge_b1": s * jax.random.normal(ks[1], (1, hidden_nf), jnp.float32),
        "edge_w2": s * jax.random.normal(ks[2], (hidden_nf, hidden_nf), jnp.float32),
        "edge_b2": s * jax.random.normal(ks[3], (1, hidden_nf), jnp.float32),
        # node_mlp: Linear(F+H, H), Linear(H, output_nf)
        "node_w1": s * jax.random.normal(ks[4], (input_nf + hidden_nf, hidden_nf), jnp.float32),
        "node_b1": s * jax.random.normal(ks[5], (1, hidden_nf), jnp.float32),
        "node_w2": s * jax.random.normal(ks[6], (hidden_nf, output_nf), jnp.float32),
        "node_b2": s * jax.random.normal(ks[7], (1, output_nf), jnp.float32),
        # coord_mlp: Linear(H, H), Linear(H, 1, bias=False) with xavier gain 0.001
        "coord_w1": s * jax.random.normal(ks[8], (hidden_nf, hidden_nf), jnp.float32),
        "coord_b1": s * jax.random.normal(ks[9], (1, hidden_nf), jnp.float32),
        "coord_w2t": 0.001 * jax.random.normal(ks[10], (1, hidden_nf), jnp.float32),
    }


if __name__ == "__main__":
    input_nf = output_nf = 16   # residual=True requires input_nf == output_nf
    hidden_nf = 32
    n_nodes = 24
    n_edges = 200               # not a multiple of the tile -> exercises padding

    key = jax.random.PRNGKey(0)
    k_h, k_c, k_r, k_col, k_p = jax.random.split(key, 5)

    h = jax.random.normal(k_h, (n_nodes, input_nf), jnp.float32)
    coord = jax.random.normal(k_c, (n_nodes, 3), jnp.float32)
    row = jax.random.randint(k_r, (n_edges,), 0, n_nodes, jnp.int32)
    col = jax.random.randint(k_col, (n_edges,), 0, n_nodes, jnp.int32)
    params = make_params(k_p, input_nf, output_nf, hidden_nf)

    h_ref, coord_ref = e_gcl_reference(h, row, col, coord, params)

    # 1) f32 MXU path with a small tile (exercises multi-tile accumulation +
    #    padding); bit-for-bit semantics of the module -> tight tolerance.
    h_f32, coord_f32, ea_f32 = e_gcl_forward(
        h, row, col, coord, params, tile_e=128, mxu_dtype=jnp.float32)
    jax.block_until_ready((h_f32, coord_f32))
    assert jnp.allclose(h_f32, h_ref, atol=1e-4, rtol=1e-4), "h mismatch (f32 path)"
    assert jnp.allclose(coord_f32, coord_ref, atol=1e-4, rtol=1e-4), "coord mismatch (f32 path)"
    assert ea_f32 is None

    # 2) Default production path: TILE_E=512, bf16 MXU operands, f32 accumulation.
    #    Tolerance reflects bf16 matmul precision (~3 significant digits); the
    #    coordinate update stays f32-accurate.
    h_bf, coord_bf, _ = e_gcl_forward(h, row, col, coord, params)
    jax.block_until_ready((h_bf, coord_bf))
    assert jnp.allclose(h_bf, h_ref, atol=5e-2, rtol=5e-2), "h mismatch (bf16 path)"
    assert jnp.allclose(coord_bf, coord_ref, atol=1e-3, rtol=1e-3), "coord mismatch (bf16 path)"

    print("KERNEL_OK")
</pallas_src>

<mosaic_0001>
module attributes {stable_mosaic.version = 11 : i64} {
  func.func @_egcl_fused_kernel(%arg0: i32, %arg1: memref<128x2xi32, #tpu.memory_space<vmem>>, %arg2: memref<24x16xf32, #tpu.memory_space<vmem>>, %arg3: memref<24x3xf32, #tpu.memory_space<vmem>>, %arg4: memref<16x32xf32, #tpu.memory_space<vmem>>, %arg5: memref<16x32xf32, #tpu.memory_space<vmem>>, %arg6: memref<1x32xf32, #tpu.memory_space<vmem>>, %arg7: memref<1x32xf32, #tpu.memory_space<vmem>>, %arg8: memref<32x32xf32, #tpu.memory_space<vmem>>, %arg9: memref<1x32xf32, #tpu.memory_space<vmem>>, %arg10: memref<32x32xf32, #tpu.memory_space<vmem>>, %arg11: memref<1x32xf32, #tpu.memory_space<vmem>>, %arg12: memref<1x32xf32, #tpu.memory_space<vmem>>, %arg13: memref<16x32xf32, #tpu.memory_space<vmem>>, %arg14: memref<32x32xf32, #tpu.memory_space<vmem>>, %arg15: memref<1x32xf32, #tpu.memory_space<vmem>>, %arg16: memref<32x16xf32, #tpu.memory_space<vmem>>, %arg17: memref<1x16xf32, #tpu.memory_space<vmem>>, %arg18: memref<24x16xf32, #tpu.memory_space<vmem>>, %arg19: memref<24x3xf32, #tpu.memory_space<vmem>>, %arg20: memref<24x128xf32, #tpu.memory_space<vmem>>, %arg21: memref<24x128xf32, #tpu.memory_space<vmem>>, %arg22: memref<24x128xf32, #tpu.memory_space<vmem>>, %arg23: memref<24x32xf32, #tpu.memory_space<vmem>>, %arg24: memref<128x128xf32, #tpu.memory_space<vmem>>) attributes {dimension_semantics = [#tpu.dimension_semantics<arbitrary>], iteration_bounds = array<i64: 2>, scalar_prefetch = 0 : i64, scratch_operands = 5 : i64, tpu.core_type = #tpu.core_type<tc>, window_params = [{transform_indices = @transform_0, window_bounds = array<i64: 128, 2>}, {pipeline_mode = #tpu.pipeline_mode<synchronous>, transform_indices = @transform_1, window_bounds = array<i64: 24, 16>}, {pipeline_mode = #tpu.pipeline_mode<synchronous>, transform_indices = @transform_2, window_bounds = array<i64: 24, 3>}, {pipeline_mode = #tpu.pipeline_mode<synchronous>, transform_indices = @transform_3, window_bounds = array<i64: 16, 32>}, {pipeline_mode = #tpu.pipeline_mode<synchronous>, transform_indices = @transform_4, window_bounds = array<i64: 16, 32>}, {pipeline_mode = #tpu.pipeline_mode<synchronous>, transform_indices = @transform_5, window_bounds = array<i64: 1, 32>}, {pipeline_mode = #tpu.pipeline_mode<synchronous>, transform_indices = @transform_6, window_bounds = array<i64: 1, 32>}, {pipeline_mode = #tpu.pipeline_mode<synchronous>, transform_indices = @transform_7, window_bounds = array<i64: 32, 32>}, {pipeline_mode = #tpu.pipeline_mode<synchronous>, transform_indices = @transform_8, window_bounds = array<i64: 1, 32>}, {pipeline_mode = #tpu.pipeline_mode<synchronous>, transform_indices = @transform_9, window_bounds = array<i64: 32, 32>}, {pipeline_mode = #tpu.pipeline_mode<synchronous>, transform_indices = @transform_10, window_bounds = array<i64: 1, 32>}, {pipeline_mode = #tpu.pipeline_mode<synchronous>, transform_indices = @transform_11, window_bounds = array<i64: 1, 32>}, {pipeline_mode = #tpu.pipeline_mode<synchronous>, transform_indices = @transform_12, window_bounds = array<i64: 16, 32>}, {pipeline_mode = #tpu.pipeline_mode<synchronous>, transform_indices = @transform_13, window_bounds = array<i64: 32, 32>}, {pipeline_mode = #tpu.pipeline_mode<synchronous>, transform_indices = @transform_14, window_bounds = array<i64: 1, 32>}, {pipeline_mode = #tpu.pipeline_mode<synchronous>, transform_indices = @transform_15, window_bounds = array<i64: 32, 16>}, {pipeline_mode = #tpu.pipeline_mode<synchronous>, transform_indices = @transform_16, window_bounds = array<i64: 1, 16>}, {pipeline_mode = #tpu.pipeline_mode<synchronous>, transform_indices = @transform_17, window_bounds = array<i64: 24, 16>}, {pipeline_mode = #tpu.pipeline_mode<synchronous>, transform_indices = @transform_18, window_bounds = array<i64: 24, 3>}]} {
    %c0_i32 = arith.constant 0 : i32
    %0 = arith.cmpi eq, %arg0, %c0_i32 : i32
    %1 = arith.extui %0 : i1 to i32
    %c0_i32_0 = arith.constant 0 : i32
    %2 = arith.cmpi ne, %1, %c0_i32_0 : i32
    scf.if %2 {
      %cst_40 = arith.constant 0.000000e+00 : f32
      %84 = vector.broadcast %cst_40 : f32 to vector<24x128xf32>
      %c0_41 = arith.constant 0 : index
      %c0_42 = arith.constant 0 : index
      %85 = vector.load %arg20[%c0_41, %c0_42] : memref<24x128xf32, #tpu.memory_space<vmem>>, vector<24x128xf32>
      tpu.vector_store %arg20[%c0_41, %c0_42], %84 {strides = array<i32>} : memref<24x128xf32, #tpu.memory_space<vmem>>, vector<24x128xf32>,
      %cst_43 = arith.constant 0.000000e+00 : f32
      %86 = vector.broadcast %cst_43 : f32 to vector<128x128xf32>
      %c0_44 = arith.constant 0 : index
      %c0_45 = arith.constant 0 : index
      %87 = vector.load %arg24[%c0_44, %c0_45] : memref<128x128xf32, #tpu.memory_space<vmem>>, vector<128x128xf32>
      tpu.vector_store %arg24[%c0_44, %c0_45], %86 {strides = array<i32>} : memref<128x128xf32, #tpu.memory_space<vmem>>, vector<128x128xf32>,
      %cst_46 = arith.constant 0.000000e+00 : f32
      %88 = vector.broadcast %cst_46 : f32 to vector<24x128xf32>
      %c0_47 = arith.constant 0 : index
      %c0_48 = arith.constant 0 : index
      %89 = vector.load %arg21[%c0_47, %c0_48] : memref<24x128xf32, #tpu.memory_space<vmem>>, vector<24x128xf32>
      tpu.vector_store %arg21[%c0_47, %c0_48], %88 {strides = array<i32>} : memref<24x128xf32, #tpu.memory_space<vmem>>, vector<24x128xf32>,
      %cst_49 = arith.constant 0.000000e+00 : f32
      %90 = vector.broadcast %cst_49 : f32 to vector<24x128xf32>
      %c0_50 = arith.constant 0 : index
      %c0_51 = arith.constant 0 : index
      %91 = vector.load %arg22[%c0_50, %c0_51] : memref<24x128xf32, #tpu.memory_space<vmem>>, vector<24x128xf32>
      tpu.vector_store %arg22[%c0_50, %c0_51], %90 {strides = array<i32>} : memref<24x128xf32, #tpu.memory_space<vmem>>, vector<24x128xf32>,
      %c0_52 = arith.constant 0 : index
      %c0_53 = arith.constant 0 : index
      %92 = vector.load %arg2[%c0_52, %c0_53] : memref<24x16xf32, #tpu.memory_space<vmem>>, vector<24x16xf32>
      %c0_54 = arith.constant 0 : index
      %c0_55 = arith.constant 0 : index
      %93 = vector.load %arg4[%c0_54, %c0_55] : memref<16x32xf32, #tpu.memory_space<vmem>>, vector<16x32xf32>
      %cst_56 = arith.constant dense<0.000000e+00> : vector<24x32xf32>
      %94 = tpu.matmul %92, %93, %cst_56 {dimension_numbers = #tpu.dot_dimension_numbers<[1], [0], [0], [1], [0, 0, 1, 1], [], []>} : vector<24x16xf32>, vector<16x32xf32>, vector<24x32xf32> -> vector<24x32xf32>
      %c0_57 = arith.constant 0 : index
      %c0_58 = arith.constant 0 : index
      %95 = vector.load %arg21[%c0_57, %c0_58] : memref<24x128xf32, #tpu.memory_space<vmem>>, vector<24x32xf32>
      tpu.vector_store %arg21[%c0_57, %c0_58], %94 {strides = array<i32>} : memref<24x128xf32, #tpu.memory_space<vmem>>, vector<24x32xf32>,
      %c0_59 = arith.constant 0 : index
      %c0_60 = arith.constant 0 : index
      %96 = vector.load %arg5[%c0_59, %c0_60] : memref<16x32xf32, #tpu.memory_space<vmem>>, vector<16x32xf32>
      %cst_61 = arith.constant dense<0.000000e+00> : vector<24x32xf32>
      %97 = tpu.matmul %92, %96, %cst_61 {dimension_numbers = #tpu.dot_dimension_numbers<[1], [0], [0], [1], [0, 0, 1, 1], [], []>} : vector<24x16xf32>, vector<16x32xf32>, vector<24x32xf32> -> vector<24x32xf32>
      %c0_62 = arith.constant 0 : index
      %c0_63 = arith.constant 0 : index
      %98 = vector.load %arg22[%c0_62, %c0_63] : memref<24x128xf32, #tpu.memory_space<vmem>>, vector<24x32xf32>
      tpu.vector_store %arg22[%c0_62, %c0_63], %97 {strides = array<i32>} : memref<24x128xf32, #tpu.memory_space<vmem>>, vector<24x32xf32>,
      %c0_64 = arith.constant 0 : index
      %c0_65 = arith.constant 0 : index
      %99 = vector.load %arg3[%c0_64, %c0_65] : memref<24x3xf32, #tpu.memory_space<vmem>>, vector<24x3xf32>
      %cst_66 = arith.constant 0.000000e+00 : f32
      %100 = vector.broadcast %cst_66 : f32 to vector<24x1xf32>
      %101 = tpu.concatenate %99, %100 in 1 : vector<24x3xf32>, vector<24x1xf32> -> vector<24x4xf32>
      %c0_67 = arith.constant 0 : index
      %c32_68 = arith.constant 32 : index
      %102 = vector.load %arg21[%c0_67, %c32_68] : memref<24x128xf32, #tpu.memory_space<vmem>>, vector<24x4xf32>
      tpu.vector_store %arg21[%c0_67, %c32_68], %101 {strides = array<i32>} : memref<24x128xf32, #tpu.memory_space<vmem>>, vector<24x4xf32>,
      %c0_69 = arith.constant 0 : index
      %c32_70 = arith.constant 32 : index
      %103 = vector.load %arg22[%c0_69, %c32_70] : memref<24x128xf32, #tpu.memory_space<vmem>>, vector<24x4xf32>
      tpu.vector_store %arg22[%c0_69, %c32_70], %101 {strides = array<i32>} : memref<24x128xf32, #tpu.memory_space<vmem>>, vector<24x4xf32>,
      %c0_71 = arith.constant 0 : index
      %c0_72 = arith.constant 0 : index
      %104 = vector.load %arg13[%c0_71, %c0_72] : memref<16x32xf32, #tpu.memory_space<vmem>>, vector<16x32xf32>
      %cst_73 = arith.constant dense<0.000000e+00> : vector<24x32xf32>
      %105 = tpu.matmul %92, %104, %cst_73 {dimension_numbers = #tpu.dot_dimension_numbers<[1], [0], [0], [1], [0, 0, 1, 1], [], []>} : vector<24x16xf32>, vector<16x32xf32>, vector<24x32xf32> -> vector<24x32xf32>
      %c0_74 = arith.constant 0 : index
      %c0_75 = arith.constant 0 : index
      %106 = vector.load %arg23[%c0_74, %c0_75] : memref<24x32xf32, #tpu.memory_space<vmem>>, vector<24x32xf32>
      tpu.vector_store %arg23[%c0_74, %c0_75], %105 {strides = array<i32>} : memref<24x32xf32, #tpu.memory_space<vmem>>, vector<24x32xf32>,
    } else {
    }
    %c0 = arith.constant 0 : index
    %c0_1 = arith.constant 0 : index
    %3 = vector.load %arg1[%c0, %c0_1] : memref<128x2xi32, #tpu.memory_space<vmem>>, vector<128x2xi32>
    %4 = tpu.iota {dimensions = array<i32: 1>} : vector<128x24xi32>
    %5 = vector.extract_strided_slice %3 {offsets = [0, 0], sizes = [128, 1], strides = [1, 1]} : vector<128x2xi32> to vector<128x1xi32>
    %6 = vector.broadcast %5 : vector<128x1xi32> to vector<128x24xi32>
    %7 = arith.cmpi eq, %6, %4 : vector<128x24xi32>
    %8 = arith.extui %7 : vector<128x24xi1> to vector<128x24xi32>
    %9 = arith.sitofp %8 : vector<128x24xi32> to vector<128x24xf32>
    %10 = vector.extract_strided_slice %3 {offsets = [0, 1], sizes = [128, 1], strides = [1, 1]} : vector<128x2xi32> to vector<128x1xi32>
    %11 = vector.broadcast %10 : vector<128x1xi32> to vector<128x24xi32>
    %12 = arith.cmpi eq, %11, %4 : vector<128x24xi32>
    %13 = arith.extui %12 : vector<128x24xi1> to vector<128x24xi32>
    %14 = arith.sitofp %13 : vector<128x24xi32> to vector<128x24xf32>
    %c0_2 = arith.constant 0 : index
    %c0_3 = arith.constant 0 : index
    %15 = vector.load %arg21[%c0_2, %c0_3] : memref<24x128xf32, #tpu.memory_space<vmem>>, vector<24x128xf32>
    %cst = arith.constant dense<0.000000e+00> : vector<128x128xf32>
    %16 = tpu.matmul %9, %15, %cst {dimension_numbers = #tpu.dot_dimension_numbers<[1], [0], [0], [1], [0, 0, 1, 1], [], []>} : vector<128x24xf32>, vector<24x128xf32>, vector<128x128xf32> -> vector<128x128xf32>
    %c0_4 = arith.constant 0 : index
    %c0_5 = arith.constant 0 : index
    %17 = vector.load %arg22[%c0_4, %c0_5] : memref<24x128xf32, #tpu.memory_space<vmem>>, vector<24x128xf32>
    %cst_6 = arith.constant dense<0.000000e+00> : vector<128x128xf32>
    %18 = tpu.matmul %14, %17, %cst_6 {dimension_numbers = #tpu.dot_dimension_numbers<[1], [0], [0], [1], [0, 0, 1, 1], [], []>} : vector<128x24xf32>, vector<24x128xf32>, vector<128x128xf32> -> vector<128x128xf32>
    %19 = vector.extract_strided_slice %16 {offsets = [0, 32], sizes = [128, 3], strides = [1, 1]} : vector<128x128xf32> to vector<128x3xf32>
    %20 = vector.extract_strided_slice %18 {offsets = [0, 32], sizes = [128, 3], strides = [1, 1]} : vector<128x128xf32> to vector<128x3xf32>
    %21 = arith.subf %19, %20 : vector<128x3xf32>
    %22 = arith.mulf %21, %21 : vector<128x3xf32>
    %cst_7 = arith.constant dense<0.000000e+00> : vector<128xf32>
    %23 = vector.multi_reduction <add>, %22, %cst_7 [1] : vector<128x3xf32> to vector<128xf32>
    %24 = vector.shape_cast %23 : vector<128xf32> to vector<128x1xf32>
    %25 = vector.extract_strided_slice %16 {offsets = [0, 0], sizes = [128, 32], strides = [1, 1]} : vector<128x128xf32> to vector<128x32xf32>
    %26 = vector.extract_strided_slice %18 {offsets = [0, 0], sizes = [128, 32], strides = [1, 1]} : vector<128x128xf32> to vector<128x32xf32>
    %27 = arith.addf %25, %26 : vector<128x32xf32>
    %c0_8 = arith.constant 0 : index
    %c0_9 = arith.constant 0 : index
    %28 = vector.load %arg6[%c0_8, %c0_9] : memref<1x32xf32, #tpu.memory_space<vmem>>, vector<1x32xf32>
    %29 = vector.broadcast %24 : vector<128x1xf32> to vector<128x32xf32>
    %30 = vector.broadcast %28 : vector<1x32xf32> to vector<128x32xf32>
    %31 = arith.mulf %29, %30 : vector<128x32xf32>
    %32 = arith.addf %27, %31 : vector<128x32xf32>
    %c0_10 = arith.constant 0 : index
    %c0_11 = arith.constant 0 : index
    %33 = vector.load %arg7[%c0_10, %c0_11] : memref<1x32xf32, #tpu.memory_space<vmem>>, vector<1x32xf32>
    %34 = vector.broadcast %33 : vector<1x32xf32> to vector<128x32xf32>
    %35 = arith.addf %32, %34 : vector<128x32xf32>
    %36 = arith.negf %35 : vector<128x32xf32>
    %37 = math.exp %36 : vector<128x32xf32>
    %cst_12 = arith.constant 1.000000e+00 : f32
    %38 = vector.broadcast %cst_12 : f32 to vector<128x32xf32>
    %39 = arith.addf %38, %37 : vector<128x32xf32>
    %40 = arith.divf %38, %39 : vector<128x32xf32>
    %41 = arith.mulf %35, %40 : vector<128x32xf32>
    %c0_13 = arith.constant 0 : index
    %c0_14 = arith.constant 0 : index
    %42 = vector.load %arg8[%c0_13, %c0_14] : memref<32x32xf32, #tpu.memory_space<vmem>>, vector<32x32xf32>
    %cst_15 = arith.constant dense<0.000000e+00> : vector<128x32xf32>
    %43 = tpu.matmul %41, %42, %cst_15 {dimension_numbers = #tpu.dot_dimension_numbers<[1], [0], [0], [1], [0, 0, 1, 1], [], []>} : vector<128x32xf32>, vector<32x32xf32>, vector<128x32xf32> -> vector<128x32xf32>
    %c0_16 = arith.constant 0 : index
    %c0_17 = arith.constant 0 : index
    %44 = vector.load %arg9[%c0_16, %c0_17] : memref<1x32xf32, #tpu.memory_space<vmem>>, vector<1x32xf32>
    %45 = vector.broadcast %44 : vector<1x32xf32> to vector<128x32xf32>
    %46 = arith.addf %43, %45 : vector<128x32xf32>
    %47 = arith.negf %46 : vector<128x32xf32>
    %48 = math.exp %47 : vector<128x32xf32>
    %cst_18 = arith.constant 1.000000e+00 : f32
    %49 = vector.broadcast %cst_18 : f32 to vector<128x32xf32>
    %50 = arith.addf %49, %48 : vector<128x32xf32>
    %51 = arith.divf %49, %50 : vector<128x32xf32>
    %52 = arith.mulf %46, %51 : vector<128x32xf32>
    %c0_19 = arith.constant 0 : index
    %c0_20 = arith.constant 0 : index
    %53 = vector.load %arg10[%c0_19, %c0_20] : memref<32x32xf32, #tpu.memory_space<vmem>>, vector<32x32xf32>
    %cst_21 = arith.constant dense<0.000000e+00> : vector<128x32xf32>
    %54 = tpu.matmul %52, %53, %cst_21 {dimension_numbers = #tpu.dot_dimension_numbers<[1], [0], [0], [1], [0, 0, 1, 1], [], []>} : vector<128x32xf32>, vector<32x32xf32>, vector<128x32xf32> -> vector<128x32xf32>
    %c0_22 = arith.constant 0 : index
    %c0_23 = arith.constant 0 : index
    %55 = vector.load %arg11[%c0_22, %c0_23] : memref<1x32xf32, #tpu.memory_space<vmem>>, vector<1x32xf32>
    %56 = vector.broadcast %55 : vector<1x32xf32> to vector<128x32xf32>
    %57 = arith.addf %54, %56 : vector<128x32xf32>
    %58 = arith.negf %57 : vector<128x32xf32>
    %59 = math.exp %58 : vector<128x32xf32>
    %cst_24 = arith.constant 1.000000e+00 : f32
    %60 = vector.broadcast %cst_24 : f32 to vector<128x32xf32>
    %61 = arith.addf %60, %59 : vector<128x32xf32>
    %62 = arith.divf %60, %61 : vector<128x32xf32>
    %63 = arith.mulf %57, %62 : vector<128x32xf32>
    %c0_25 = arith.constant 0 : index
    %c0_26 = arith.constant 0 : index
    %64 = vector.load %arg12[%c0_25, %c0_26] : memref<1x32xf32, #tpu.memory_space<vmem>>, vector<1x32xf32>
    %65 = vector.broadcast %64 : vector<1x32xf32> to vector<128x32xf32>
    %66 = arith.mulf %63, %65 : vector<128x32xf32>
    %cst_27 = arith.constant dense<0.000000e+00> : vector<128xf32>
    %67 = vector.multi_reduction <add>, %66, %cst_27 [1] : vector<128x32xf32> to vector<128xf32>
    %68 = vector.shape_cast %67 : vector<128xf32> to vector<128x1xf32>
    %69 = vector.broadcast %68 : vector<128x1xf32> to vector<128x3xf32>
    %70 = arith.mulf %21, %69 : vector<128x3xf32>
    %c0_28 = arith.constant 0 : index
    %c0_29 = arith.constant 0 : index
    %71 = vector.load %arg24[%c0_28, %c0_29] : memref<128x128xf32, #tpu.memory_space<vmem>>, vector<128x32xf32>
    tpu.vector_store %arg24[%c0_28, %c0_29], %52 {strides = array<i32>} : memref<128x128xf32, #tpu.memory_space<vmem>>, vector<128x32xf32>,
    %cst_30 = arith.constant 1.000000e+00 : f32
    %72 = vector.broadcast %cst_30 : f32 to vector<128x1xf32>
    %73 = tpu.concatenate %70, %72 in 1 : vector<128x3xf32>, vector<128x1xf32> -> vector<128x4xf32>
    %c0_31 = arith.constant 0 : index
    %c32 = arith.constant 32 : index
    %74 = vector.load %arg24[%c0_31, %c32] : memref<128x128xf32, #tpu.memory_space<vmem>>, vector<128x4xf32>
    tpu.vector_store %arg24[%c0_31, %c32], %73 {strides = array<i32>} : memref<128x128xf32, #tpu.memory_space<vmem>>, vector<128x4xf32>,
    %75 = tpu.transpose %9, [1, 0] : vector<128x24xf32> -> vector<24x128xf32>
    %c0_32 = arith.constant 0 : index
    %c0_33 = arith.constant 0 : index
    %76 = vector.load %arg20[%c0_32, %c0_33] : memref<24x128xf32, #tpu.memory_space<vmem>>, vector<24x128xf32>
    %c0_34 = arith.constant 0 : index
    %c0_35 = arith.constant 0 : index
    %77 = vector.load %arg24[%c0_34, %c0_35] : memref<128x128xf32, #tpu.memory_space<vmem>>, vector<128x128xf32>
    %cst_36 = arith.constant dense<0.000000e+00> : vector<24x128xf32>
    %78 = tpu.matmul %75, %77, %cst_36 {dimension_numbers = #tpu.dot_dimension_numbers<[1], [0], [0], [1], [0, 0, 1, 1], [], []>} : vector<24x128xf32>, vector<128x128xf32>, vector<24x128xf32> -> vector<24x128xf32>
    %79 = arith.addf %76, %78 : vector<24x128xf32>
    %c0_37 = arith.constant 0 : index
    %c0_38 = arith.constant 0 : index
    %80 = vector.load %arg20[%c0_37, %c0_38] : memref<24x128xf32, #tpu.memory_space<vmem>>, vector<24x128xf32>
    tpu.vector_store %arg20[%c0_37, %c0_38], %79 {strides = array<i32>} : memref<24x128xf32, #tpu.memory_space<vmem>>, vector<24x128xf32>,
    %c1_i32 = arith.constant 1 : i32
    %81 = arith.cmpi eq, %arg0, %c1_i32 : i32
    %82 = arith.extui %81 : i1 to i32
    %c0_i32_39 = arith.constant 0 : i32
    %83 = arith.cmpi ne, %82, %c0_i32_39 : i32
    scf.if %83 {
      %c0_40 = arith.constant 0 : index
      %c0_41 = arith.constant 0 : index
      %84 = vector.load %arg20[%c0_40, %c0_41] : memref<24x128xf32, #tpu.memory_space<vmem>>, vector<24x32xf32>
      %c0_42 = arith.constant 0 : index
      %c32_43 = arith.constant 32 : index
      %85 = vector.load %arg20[%c0_42, %c32_43] : memref<24x128xf32, #tpu.memory_space<vmem>>, vector<24x3xf32>
      %c0_44 = arith.constant 0 : index
      %c35 = arith.constant 35 : index
      %86 = vector.load %arg20[%c0_44, %c35] : memref<24x128xf32, #tpu.memory_space<vmem>>, vector<24x1xf32>
      %c0_45 = arith.constant 0 : index
      %c0_46 = arith.constant 0 : index
      %87 = vector.load %arg23[%c0_45, %c0_46] : memref<24x32xf32, #tpu.memory_space<vmem>>, vector<24x32xf32>
      %c0_47 = arith.constant 0 : index
      %c0_48 = arith.constant 0 : index
      %88 = vector.load %arg14[%c0_47, %c0_48] : memref<32x32xf32, #tpu.memory_space<vmem>>, vector<32x32xf32>
      %cst_49 = arith.constant dense<0.000000e+00> : vector<24x32xf32>
      %89 = tpu.matmul %84, %88, %cst_49 {dimension_numbers = #tpu.dot_dimension_numbers<[1], [0], [0], [1], [0, 0, 1, 1], [], []>} : vector<24x32xf32>, vector<32x32xf32>, vector<24x32xf32> -> vector<24x32xf32>
      %90 = arith.addf %87, %89 : vector<24x32xf32>
      %c0_50 = arith.constant 0 : index
      %c0_51 = arith.constant 0 : index
      %91 = vector.load %arg15[%c0_50, %c0_51] : memref<1x32xf32, #tpu.memory_space<vmem>>, vector<1x32xf32>
      %92 = vector.broadcast %91 : vector<1x32xf32> to vector<24x32xf32>
      %93 = arith.addf %90, %92 : vector<24x32xf32>
      %94 = arith.negf %93 : vector<24x32xf32>
      %95 = math.exp %94 : vector<24x32xf32>
      %cst_52 = arith.constant 1.000000e+00 : f32
      %96 = vector.broadcast %cst_52 : f32 to vector<24x32xf32>
      %97 = arith.addf %96, %95 : vector<24x32xf32>
      %98 = arith.divf %96, %97 : vector<24x32xf32>
      %99 = arith.mulf %93, %98 : vector<24x32xf32>
      %c0_53 = arith.constant 0 : index
      %c0_54 = arith.constant 0 : index
      %100 = vector.load %arg16[%c0_53, %c0_54] : memref<32x16xf32, #tpu.memory_space<vmem>>, vector<32x16xf32>
      %cst_55 = arith.constant dense<0.000000e+00> : vector<24x16xf32>
      %101 = tpu.matmul %99, %100, %cst_55 {dimension_numbers = #tpu.dot_dimension_numbers<[1], [0], [0], [1], [0, 0, 1, 1], [], []>} : vector<24x32xf32>, vector<32x16xf32>, vector<24x16xf32> -> vector<24x16xf32>
      %c0_56 = arith.constant 0 : index
      %c0_57 = arith.constant 0 : index
      %102 = vector.load %arg17[%c0_56, %c0_57] : memref<1x16xf32, #tpu.memory_space<vmem>>, vector<1x16xf32>
      %103 = vector.broadcast %102 : vector<1x16xf32> to vector<24x16xf32>
      %104 = arith.addf %101, %103 : vector<24x16xf32>
      %c0_58 = arith.constant 0 : index
      %c0_59 = arith.constant 0 : index
      %105 = vector.load %arg2[%c0_58, %c0_59] : memref<24x16xf32, #tpu.memory_space<vmem>>, vector<24x16xf32>
      %106 = arith.addf %105, %104 : vector<24x16xf32>
      %c0_60 = arith.constant 0 : index
      %c0_61 = arith.constant 0 : index
      %107 = vector.load %arg18[%c0_60, %c0_61] : memref<24x16xf32, #tpu.memory_space<vmem>>, vector<24x16xf32>
      tpu.vector_store %arg18[%c0_60, %c0_61], %106 {strides = array<i32>} : memref<24x16xf32, #tpu.memory_space<vmem>>, vector<24x16xf32>,
      %c0_62 = arith.constant 0 : index
      %c0_63 = arith.constant 0 : index
      %108 = vector.load %arg3[%c0_62, %c0_63] : memref<24x3xf32, #tpu.memory_space<vmem>>, vector<24x3xf32>
      %cst_64 = arith.constant 1.000000e+00 : f32
      %109 = vector.broadcast %cst_64 : f32 to vector<24x1xf32>
      %110 = arith.maximumf %86, %109 : vector<24x1xf32>
      %111 = vector.broadcast %110 : vector<24x1xf32> to vector<24x3xf32>
      %112 = arith.divf %85, %111 : vector<24x3xf32>
      %113 = arith.addf %108, %112 : vector<24x3xf32>
      %c0_65 = arith.constant 0 : index
      %c0_66 = arith.constant 0 : index
      %114 = vector.load %arg19[%c0_65, %c0_66] : memref<24x3xf32, #tpu.memory_space<vmem>>, vector<24x3xf32>
      tpu.vector_store %arg19[%c0_65, %c0_66], %113 {strides = array<i32>} : memref<24x3xf32, #tpu.memory_space<vmem>>, vector<24x3xf32>,
    } else {
    }
    return
  }
  func.func @transform_0(%arg0: i32) -> (i32, i32) {
    %c0_i32 = arith.constant 0 : i32
    %c0_i32_0 = arith.constant 0 : i32
    return %arg0, %c0_i32 : i32, i32
  }
  func.func @transform_1(%arg0: i32) -> (i32, i32) {
    %c0_i32 = arith.constant 0 : i32
    %c0_i32_0 = arith.constant 0 : i32
    %c0_i32_1 = arith.constant 0 : i32
    return %c0_i32, %c0_i32_0 : i32, i32
  }
  func.func @transform_2(%arg0: i32) -> (i32, i32) {
    %c0_i32 = arith.constant 0 : i32
    %c0_i32_0 = arith.constant 0 : i32
    %c0_i32_1 = arith.constant 0 : i32
    return %c0_i32, %c0_i32_0 : i32, i32
  }
  func.func @transform_3(%arg0: i32) -> (i32, i32) {
    %c0_i32 = arith.constant 0 : i32
    %c0_i32_0 = arith.constant 0 : i32
    %c0_i32_1 = arith.constant 0 : i32
    return %c0_i32, %c0_i32_0 : i32, i32
  }
  func.func @transform_4(%arg0: i32) -> (i32, i32) {
    %c0_i32 = arith.constant 0 : i32
    %c0_i32_0 = arith.constant 0 : i32
    %c0_i32_1 = arith.constant 0 : i32
    return %c0_i32, %c0_i32_0 : i32, i32
  }
  func.func @transform_5(%arg0: i32) -> (i32, i32) {
    %c0_i32 = arith.constant 0 : i32
    %c0_i32_0 = arith.constant 0 : i32
    %c0_i32_1 = arith.constant 0 : i32
    return %c0_i32, %c0_i32_0 : i32, i32
  }
  func.func @transform_6(%arg0: i32) -> (i32, i32) {
    %c0_i32 = arith.constant 0 : i32
    %c0_i32_0 = arith.constant 0 : i32
    %c0_i32_1 = arith.constant 0 : i32
    return %c0_i32, %c0_i32_0 : i32, i32
  }
  func.func @transform_7(%arg0: i32) -> (i32, i32) {
    %c0_i32 = arith.constant 0 : i32
    %c0_i32_0 = arith.constant 0 : i32
    %c0_i32_1 = arith.constant 0 : i32
    return %c0_i32, %c0_i32_0 : i32, i32
  }
  func.func @transform_8(%arg0: i32) -> (i32, i32) {
    %c0_i32 = arith.constant 0 : i32
    %c0_i32_0 = arith.constant 0 : i32
    %c0_i32_1 = arith.constant 0 : i32
    return %c0_i32, %c0_i32_0 : i32, i32
  }
  func.func @transform_9(%arg0: i32) -> (i32, i32) {
    %c0_i32 = arith.constant 0 : i32
    %c0_i32_0 = arith.constant 0 : i32
    %c0_i32_1 = arith.constant 0 : i32
    return %c0_i32, %c0_i32_0 : i32, i32
  }
  func.func @transform_10(%arg0: i32) -> (i32, i32) {
    %c0_i32 = arith.constant 0 : i32
    %c0_i32_0 = arith.constant 0 : i32
    %c0_i32_1 = arith.constant 0 : i32
    return %c0_i32, %c0_i32_0 : i32, i32
  }
  func.func @transform_11(%arg0: i32) -> (i32, i32) {
    %c0_i32 = arith.constant 0 : i32
    %c0_i32_0 = arith.constant 0 : i32
    %c0_i32_1 = arith.constant 0 : i32
    return %c0_i32, %c0_i32_0 : i32, i32
  }
  func.func @transform_12(%arg0: i32) -> (i32, i32) {
    %c0_i32 = arith.constant 0 : i32
    %c0_i32_0 = arith.constant 0 : i32
    %c0_i32_1 = arith.constant 0 : i32
    return %c0_i32, %c0_i32_0 : i32, i32
  }
  func.func @transform_13(%arg0: i32) -> (i32, i32) {
    %c0_i32 = arith.constant 0 : i32
    %c0_i32_0 = arith.constant 0 : i32
    %c0_i32_1 = arith.constant 0 : i32
    return %c0_i32, %c0_i32_0 : i32, i32
  }
  func.func @transform_14(%arg0: i32) -> (i32, i32) {
    %c0_i32 = arith.constant 0 : i32
    %c0_i32_0 = arith.constant 0 : i32
    %c0_i32_1 = arith.constant 0 : i32
    return %c0_i32, %c0_i32_0 : i32, i32
  }
  func.func @transform_15(%arg0: i32) -> (i32, i32) {
    %c0_i32 = arith.constant 0 : i32
    %c0_i32_0 = arith.constant 0 : i32
    %c0_i32_1 = arith.constant 0 : i32
    return %c0_i32, %c0_i32_0 : i32, i32
  }
  func.func @transform_16(%arg0: i32) -> (i32, i32) {
    %c0_i32 = arith.constant 0 : i32
    %c0_i32_0 = arith.constant 0 : i32
    %c0_i32_1 = arith.constant 0 : i32
    return %c0_i32, %c0_i32_0 : i32, i32
  }
  func.func @transform_17(%arg0: i32) -> (i32, i32) {
    %c0_i32 = arith.constant 0 : i32
    %c0_i32_0 = arith.constant 0 : i32
    %c0_i32_1 = arith.constant 0 : i32
    return %c0_i32, %c0_i32_0 : i32, i32
  }
  func.func @transform_18(%arg0: i32) -> (i32, i32) {
    %c0_i32 = arith.constant 0 : i32
    %c0_i32_0 = arith.constant 0 : i32
    %c0_i32_1 = arith.constant 0 : i32
    return %c0_i32, %c0_i32_0 : i32, i32
  }
}

</mosaic_0001>

<bundles_post_ra>
// kernel: e_gcl_forward.1
= control target key start
LH: loop header
LB: loop body
LE: loop exit
PB: predicated region body
PF: predicated region fallthrough
CT: control target
= control target key end

     0   :  { %s4160_s27 = smov 0   ;;  %s5115_s0 = inlined_call_operand.vmem [shape: s32[256,2], index: 0, kind: input, shape index: {}]   ;;  %s5116_s1 = inlined_call_operand.vmem [shape: f32[24,16], index: 1, kind: input, shape index: {}]   ;;  %s5117_s2 = inlined_call_operand.vmem [shape: f32[24,3], index: 2, kind: input, shape index: {}]   ;;  %s5118_s3 = inlined_call_operand.vmem [shape: f32[16,32], index: 3, kind: input, shape index: {}]   ;;  %s5119_s4 = inlined_call_operand.vmem [shape: f32[16,32], index: 4, kind: input, shape index: {}]   ;;  %s5120_s5 = inlined_call_operand.vmem [shape: f32[1,32], index: 5, kind: input, shape index: {}]   ;;  %s5121_s6 = inlined_call_operand.vmem [shape: f32[1,32], index: 6, kind: input, shape index: {}]   ;;  %s5122_s7 = inlined_call_operand.vmem [shape: f32[32,32], index: 7, kind: input, shape index: {}]   ;;  %s5123_s8 = inlined_call_operand.vmem [shape: f32[1,32], index: 8, kind: input, shape index: {}]   ;;  %s5124_s9 = inlined_call_operand.vmem [shape: f32[32,32], index: 9, kind: input, shape index: {}]   ;;  %s5125_s10 = inlined_call_operand.vmem [shape: f32[1,32], index: 10, kind: input, shape index: {}]   ;;  %s5126_s11 = inlined_call_operand.vmem [shape: f32[1,32], index: 11, kind: input, shape index: {}]   ;;  %s5127_s12 = inlined_call_operand.vmem [shape: f32[16,32], index: 12, kind: input, shape index: {}]   ;;  %s5128_s13 = inlined_call_operand.vmem [shape: f32[32,32], index: 13, kind: input, shape index: {}]   ;;  %s5129_s14 = inlined_call_operand.vmem [shape: f32[1,32], index: 14, kind: input, shape index: {}]   ;;  %s5130_s15 = inlined_call_operand.vmem [shape: f32[32,16], index: 15, kind: input, shape index: {}]   ;;  %s5131_s16 = inlined_call_operand.vmem [shape: f32[1,16], index: 16, kind: input, shape index: {}]   ;;  %s5132_s17 = inlined_call_operand.vmem [shape: f32[24,16], index: 17, kind: output, shape index: {0}]   ;;  %s5133_s18 = inlined_call_operand.vmem [shape: f32[24,3], index: 18, kind: output, shape index: {1}]  }
   0x1   :  { %5142 = sst [smem:[#allocation9_spill]] %s5115_s0 }
   0x2   :  { %5143 = sst [smem:[#allocation10_spill]] %s5116_s1 }
   0x3   :  { %5144 = sst [smem:[#allocation11_spill]] %s5117_s2 }
   0x4 LB: > { %s4166_s28 = sadd.s32 4294967295, %s4047_s27   ;;  %p3186_p0 = scmp.ge.s32.totalorder %s4047_s27, 1  ;;  %s4047_s27 = sphi %s4160_s27, %s29_s27  }
   0x5   : > { %p506_p1 = scmp.lt.s32.totalorder %s4047_s27, 3 }
   0x7   : > { %p507_p2 = pnand %p3186_p0, %p506_p1 }
   0x9   : > { %510 = sbr.rel (%p507_p2) target bundleno = 2572 (0xa0c), region = 88 }
  0x10   : > { %s3187_s29 = sshll.u32 %s4166_s28, 4  ;;  %s5145_s1 = sld [smem:[#allocation9_spill]] }
  0x11   : > { %p556_p3 = scmp.lt.s32.totalorder %s3187_s29, 31  ;;  %p3189_p4 = scmp.ne.s32.totalorder %s4166_s28, 0 }
  0x12   : > { %v593_v0 = vld [vmem:[%s5118_s3] sm:$0xff] (!%p3189_p4)  ;;  %v594_v1 = vld [vmem:[%s5118_s3 + $0x8] sm:$0xff] (!%p3189_p4)  ;;  %v4049_v2 = vmov (!%p3189_p4), 0.0|0.0   ;;  %v4050_v4 = vmov (!%p3189_p4), 0.0   ;;  %vm4051_vm0 = vmmov (!%p3189_p4), 0   ;;  %s5146_s26 = sld [smem:[#allocation10_spill]] (!%p3189_p4) }
  0x13   : > { %s5156_s29 = smov (!%p556_p3, %s3187_s29), 31  ;;  %564 = sbr.rel (%p3189_p4) target bundleno = 255 (0xff), region = 92 }
  0x14   : > { %s3188_s30 = sshll.u32 %s5156_s29, 3  ;;  %3795 = vmatprep.subr.bf16.mxu1 (!%p3189_p4), %v4049_v2  ;;  %v3727_v3 = vpack.c.bf16 (!%p3189_p4), %v594_v1, %v593_v0  ;;  %565 = vst [vmem:[#allocation2] sm:$0xff] (!%p3189_p4), %v4050_v4  ;;  %566 = vst [vmem:[#allocation2 + $0x8] sm:$0xff] (!%p3189_p4), %v4050_v4  ;;  %3495 = vmatprep.mubr.msk.f32.mxu1 (!%p3189_p4), %vm4051_vm0, %v4050_v4  ;;  %v689_v6 = vld [vmem:[%s5119_s4] sm:$0xff] (!%p3189_p4)  ;;  %v690_v7 = vld [vmem:[%s5119_s4 + $0x8] sm:$0xff] (!%p3189_p4)  ;;  %vm777_vm1 = vcmask (!%p3189_p4), 23552  }
  0x15   : > { %567 = vst [vmem:[#allocation2 + $0x10] sm:$0xff] (!%p3189_p4), %v4050_v4  ;;  %568 = vst [vmem:[#allocation6] sm:$0xff] (!%p3189_p4), %v4050_v4  ;;  %3726 = vmatprep.subr.bf16.mxu0 (!%p3189_p4), %v4049_v2  ;;  %3492 = vmatprep.mubr.msk.f32.mxu0 (!%p3189_p4), %vm4051_vm0, %v4050_v4  ;;  %v800_v9 = vld [vmem:[%s5127_s12] sm:$0xff] (!%p3189_p4)  ;;  %v801_v10 = vld [vmem:[%s5127_s12 + $0x8] sm:$0xff] (!%p3189_p4)  ;;  %vm595_vm2 = vcmask (!%p3189_p4), 130048   ;;  %v3730_v11 = vpack.c.bf16 (!%p3189_p4), %v690_v7, %v689_v6  ;;  %s4052_s22 = smov (!%p3189_p4), 32  }
  0x16   : > { %s4174_s20 = scalar_lea.vmem %s5145_s1, %s3188_s30  ;;  %569 = vst [vmem:[#allocation6 + $0x8] sm:$0xff] (!%p3189_p4), %v4050_v4  ;;  %570 = vst [vmem:[#allocation6 + $0x10] sm:$0xff] (!%p3189_p4), %v4050_v4  ;;  %3796 = vmatpush3.bf16.msra.mxu1 (!%p3189_p4), %v3727_v3  ;;  %3728 = vmatpush3.bf16.msra.mxu0 (!%p3189_p4), %v3727_v3  ;;  %s5147_s30 = sld [smem:[#allocation11_spill]] (!%p3189_p4)  ;;  %v3733_v15 = vpack.c.bf16 (!%p3189_p4), %v801_v10, %v800_v9  ;;  %vm685_vm3 = vcmask (!%p3189_p4), 261120   ;;  %vm793_vm4 = vcmask (!%p3189_p4), 294144  }
  0x17   : > { %571 = vst [vmem:[#allocation6 + $0x18] sm:$0xff] (!%p3189_p4), %v4050_v4  ;;  %572 = vst [vmem:[#allocation6 + $0x20] sm:$0xff] (!%p3189_p4), %v4050_v4  ;;  %3729 = vmatprep.subr.bf16.mxu1 (!%p3189_p4), %v4049_v2  ;;  %3732 = vmatprep.subr.bf16.mxu0 (!%p3189_p4), %v4049_v2 }
  0x18   : > { %573 = vst [vmem:[#allocation6 + $0x28] sm:$0xff] (!%p3189_p4), %v4050_v4  ;;  %574 = vst [vmem:[#allocation6 + $0x30] sm:$0xff] (!%p3189_p4), %v4050_v4  ;;  %v591_v5 = vld [vmem:[%s5146_s26 + $0x8] sm:$0xff] (!%p3189_p4)  ;;  %v590_v8 = vld [vmem:[%s5146_s26] sm:$0xff] (!%p3189_p4) }
  0x19   : > { %575 = vst [vmem:[#allocation6 + $0x38] sm:$0xff] (!%p3189_p4), %v4050_v4  ;;  %576 = vst [vmem:[#allocation6 + $0x40] sm:$0xff] (!%p3189_p4), %v4050_v4  ;;  %3496 = vmatmul.mubr.msk.f32.vlgmr.msra.gmra.mrb[0].mxu1 (!%p3189_p4), %vm595_vm2, %v591_v5  ;;  %3493 = vmatmul.mubr.msk.f32.vlgmr.msra.gmra.mrb[0].mxu0 (!%p3189_p4), %vm595_vm2, %v590_v8  ;;  %v592_v19 = vld [vmem:[%s5146_s26 + $0x10] sm:$0xff] (!%p3189_p4) }
  0x1a   : > { %577 = vst [vmem:[#allocation6 + $0x48] sm:$0xff] %v4050_v4  ;;  %578 = vst [vmem:[#allocation6 + $0x50] sm:$0xff] %v4050_v4  ;;  %3731 = vmatpush3.bf16.msra.mxu1 %v3730_v11  ;;  %3498 = vmatprep.mubr.msk.f32.mxu1 %vm4051_vm0, %v4050_v4 }
  0x1b   : > { %579 = vst [vmem:[#allocation6 + $0x58] sm:$0xff] %v4050_v4  ;;  %580 = vst [vmem:[#allocation6 + $0x60] sm:$0xff] %v4050_v4  ;;  %3734 = vmatpush3.bf16.msra.mxu0 %v3733_v15  ;;  %3518 = vmatprep.mubr.msk.f32.mxu0 %vm4051_vm0, %v4050_v4 }
  0x1c   : > { %581 = vst [vmem:[#allocation6 + $0x68] sm:$0xff] %v4050_v4  ;;  %582 = vst [vmem:[#allocation6 + $0x70] sm:$0xff] %v4050_v4  ;;  %v774_v12 = vld [vmem:[%s5147_s30] sm:$0xff]  ;;  %v776_v13 = vld [vmem:[%s5147_s30 + $0x10] sm:$0xff] }
  0x1d   : > { %583 = vst [vmem:[#allocation6 + $0x78] sm:$0xff] %v4050_v4  ;;  %584 = vst [vmem:[#allocation3] sm:$0xff] %v4050_v4  ;;  %v775_v14 = vld [vmem:[%s5147_s30 + $0x8] sm:$0xff]  ;;  %v778_v16 = vsel %vm777_vm1, %v774_v12, 0.0  ;;  %v780_v17 = vsel %vm777_vm1, %v776_v13, 0.0  ;;  %3499 = vmatmul.mubr.msk.f32.gmra.mrb[2].mxu1 %vm595_vm2, %v592_v19 }
  0x1e   : > { %585 = vst [vmem:[#allocation3 + $0x8] sm:$0xff] %v4050_v4  ;;  %586 = vst [vmem:[#allocation3 + $0x10] sm:$0xff] %v4050_v4  ;;  %784 = vrot.lane.b32.xlu0 %v778_v16, %s4052_s22  ;;  %788 = vrot.lane.b32.xlu1 %v780_v17, %s4052_s22  ;;  %v779_v18 = vsel %vm777_vm1, %v775_v14, 0.0 }
  0x1f   : > { %587 = vst [vmem:[#allocation4] sm:$0xff] %v4050_v4  ;;  %588 = vst [vmem:[#allocation4 + $0x8] sm:$0xff] %v4050_v4  ;;  %3505 = vmatprep.mubr.msk.f32.mxu1 %vm4051_vm0, %v4050_v4  ;;  %3519 = vmatmul.mubr.msk.f32.vlgmr.msra.gmra.mrb[2].mxu0 %vm595_vm2, %v590_v8 }
  0x20   : > { %589 = vst [vmem:[#allocation4 + $0x10] sm:$0xff] %v4050_v4  ;;  %3521 = vmatprep.mubr.msk.f32.mxu0 %vm4051_vm0, %v4050_v4 }
  0x21   : > { %3506 = vmatmul.mubr.msk.f32.vlgmr.msra.gmra.mrb[4].mxu1 %vm595_vm2, %v590_v8 }
  0x22   : > { %786 = vrot.lane.b32.xlu0 %v779_v18, %s4052_s22  ;;  %3508 = vmatprep.mubr.msk.f32.mxu1 %vm4051_vm0, %v4050_v4 }
  0x23   : > { %3522 = vmatmul.mubr.msk.f32.gmra.mrb[4].mxu0 %vm595_vm2, %v591_v5 }
  0x24   : > { %3524 = vmatprep.mubr.msk.f32.mxu0 %vm4051_vm0, %v4050_v4 }
  0x25   : > { %3509 = vmatmul.mubr.msk.f32.gmra.mrb[6].mxu1 %vm595_vm2, %v591_v5 }
  0x26   : > { %3511 = vmatprep.mubr.msk.f32.mxu1 %vm4051_vm0, %v4050_v4 }
  0x27   : > { %3525 = vmatmul.mubr.msk.f32.gmra.mrb[6].mxu0 %vm595_vm2, %v592_v19 }
  0x29   : > { %3512 = vmatmul.mubr.msk.f32.gmra.mrb[8].mxu1 %vm595_vm2, %v592_v19 }
  0x90   : > { %v785_v20 = vpop.permute.xlu0 %784  ;;  %v789_v26 = vpop.permute.xlu1 %788 }
  0x94   : > { %v787_v21 = vpop.permute.xlu0 %786 }
  0xec   : > { %v676_v22 = vpop.f32.mrb[0].mxu1  ;;  %v671_v23 = vpop.f32.mrb[0].mxu0 }
  0xed   : > { %687 = vst.msk [vmem:[#allocation3 + $0x8] sm:$0xff] %vm685_vm3, %v676_v22  ;;  %v3497_v24 = vpop.f32.mrb[1].mxu1  ;;  %686 = vst.msk [vmem:[#allocation3] sm:$0xff] %vm685_vm3, %v671_v23  ;;  %v3494_v25 = vpop.f32.mrb[1].mxu0 }
  0xee   : > { %794 = vst.msk [vmem:[#allocation3] sm:$0xff] %vm793_vm4, %v785_v20  ;;  %795 = vst.msk [vmem:[#allocation3 + $0x8] sm:$0xff] %vm793_vm4, %v787_v21 }
  0xf0   : > { %v681_v27 = vpop.f32.mrb[2].mxu1 }
  0xf1   : > { %688 = vst.msk [vmem:[#allocation3 + $0x10] sm:$0xff] %vm685_vm3, %v681_v27  ;;  %v3500_v28 = vpop.f32.mrb[3].mxu1 }
  0xf2   : > { %v868_v29 = vpop.f32.mrb[2].mxu0  ;;  %796 = vst.msk [vmem:[#allocation3 + $0x10] sm:$0xff] %vm793_vm4, %v789_v26 }
  0xf3   : > { %882 = vst.msk [vmem:[#allocation5] sm:$0xff] %vm685_vm3, %v868_v29  ;;  %v3520_v30 = vpop.f32.mrb[3].mxu0 }
  0xf4   : > { %v757_v31 = vpop.f32.mrb[4].mxu1 }
  0xf5   : > { %771 = vst.msk [vmem:[#allocation4] sm:$0xff] %vm685_vm3, %v757_v31  ;;  %v3507_v32 = vpop.f32.mrb[5].mxu1 }
  0xf6   : > { %v873_v33 = vpop.f32.mrb[4].mxu0  ;;  %797 = vst.msk [vmem:[#allocation4] sm:$0xff] %vm793_vm4, %v785_v20 }
  0xf7   : > { %883 = vst.msk [vmem:[#allocation5 + $0x8] sm:$0xff] %vm685_vm3, %v873_v33  ;;  %v3523_v34 = vpop.f32.mrb[5].mxu0 }
  0xf8   : > { %v762_v35 = vpop.f32.mrb[6].mxu1 }
  0xf9   : > { %772 = vst.msk [vmem:[#allocation4 + $0x8] sm:$0xff] %vm685_vm3, %v762_v35  ;;  %v3510_v36 = vpop.f32.mrb[7].mxu1 }
  0xfa   : > { %v878_v37 = vpop.f32.mrb[6].mxu0  ;;  %798 = vst.msk [vmem:[#allocation4 + $0x8] sm:$0xff] %vm793_vm4, %v787_v21 }
  0xfb   : > { %884 = vst.msk [vmem:[#allocation5 + $0x10] sm:$0xff] %vm685_vm3, %v878_v37  ;;  %v3526_v38 = vpop.f32.mrb[7].mxu0 }
  0xfc   : > { %v767_v39 = vpop.f32.mrb[8].mxu1 }
  0xfd   : > { %773 = vst.msk [vmem:[#allocation4 + $0x10] sm:$0xff] %vm685_vm3, %v767_v39  ;;  %v3513_v40 = vpop.f32.mrb[9].mxu1 }
  0xfe   : > { %799 = vst.msk [vmem:[#allocation4 + $0x10] sm:$0xff] %vm793_vm4, %v789_v26 }
  0xff PF: > { %v4284_v41 = vld [vmem:[%s4174_s20 + $0x70] sm:$0xff]  ;;  %v885_v42 = vld [vmem:[%s4174_s20] sm:$0xff]  ;;  %v4053_v43 = vmov 0   ;;  %v900_v44 = vld [vmem:[%s4174_s20 + $0x78] sm:$0xff]  ;;  %v4054_v47 = vmov 1   ;;  %v901_v2 = vlaneseq  ;;  %vm1098_vm5 = vcmask 195584  }
 0x100   : > { %3826 = vset.pattern.permute.xlu1 %v4053_v43  ;;  %3825 = vset.pattern.permute.xlu0 %v4053_v43  ;;  %v1095_v45 = vld [vmem:[#allocation3] sm:$0xff]  ;;  %v1096_v46 = vld [vmem:[#allocation3 + $0x8] sm:$0xff]  ;;  %v886_v48 = vld [vmem:[%s4174_s20 + $0x8] sm:$0xff]  ;;  %v5138_v6 = vmov 0.0   ;;  %s4058_s25 = smov 32   ;;  %p3348_p5 = scmp.ne.s32.totalorder %s4166_s28, 1 }
 0x101   : > { %946 = vperm.xlu0 %3825, %v4284_v41   ;;  %904 = vperm.xlu1 %3826, %v885_v42   ;;  %v3735_v49 = vpack.c.bf16 %v1096_v46, %v1095_v45  ;;  %v1097_v50 = vld [vmem:[#allocation3 + $0x10] sm:$0xff]  ;;  %v1292_v51 = vld [vmem:[#allocation4] sm:$0xff]  ;;  %v1293_v52 = vld [vmem:[#allocation4 + $0x8] sm:$0xff]  ;;  %v4306_v3 = vand.u32 127, %v901_v2  ;;  %s4064_s30 = smov (!%p3348_p5), 96   ;;  %s5153_s22 = sld [smem:[#allocation11_spill]] (!%p3348_p5) }
 0x102   : > { %v4290_v53 = vpack.c.bf16 %v1293_v52, %v1292_v51  ;;  %v887_v54 = vld [vmem:[%s4174_s20 + $0x10] sm:$0xff]  ;;  %v888_v55 = vld [vmem:[%s4174_s20 + $0x18] sm:$0xff]  ;;  %v889_v56 = vld [vmem:[%s4174_s20 + $0x20] sm:$0xff]  ;;  %s5154_s2 = sld [smem:[#allocation10_spill]] (!%p3348_p5) }
 0x103   : > { %3797 = vmatprep.subr.bf16.mxu1 %v3735_v49  ;;  %3736 = vmatprep.subr.bf16.mxu0 %v3735_v49  ;;  %v890_v57 = vld [vmem:[%s4174_s20 + $0x28] sm:$0xff]  ;;  %v891_v58 = vld [vmem:[%s4174_s20 + $0x30] sm:$0xff]  ;;  %v892_v59 = vld [vmem:[%s4174_s20 + $0x38] sm:$0xff] }
 0x104   : > { %3799 = vmatpush3.bf16.msra.mxu1 %v3735_v49  ;;  %3738 = vmatpush3.bf16.msra.mxu0 %v3735_v49  ;;  %v893_v60 = vld [vmem:[%s4174_s20 + $0x40] sm:$0xff]  ;;  %v894_v61 = vld [vmem:[%s4174_s20 + $0x48] sm:$0xff]  ;;  %v895_v62 = vld [vmem:[%s4174_s20 + $0x50] sm:$0xff] }
 0x105   : > { %949 = vperm.xlu0 %3825, %v900_v44   ;;  %3827 = vset.pattern.permute.xlu1 %v4054_v47  ;;  %v896_v63 = vld [vmem:[%s4174_s20 + $0x58] sm:$0xff]  ;;  %v897_v0 = vld [vmem:[%s4174_s20 + $0x60] sm:$0xff]  ;;  %v898_v1 = vld [vmem:[%s4174_s20 + $0x68] sm:$0xff]  ;;  %s4056_s20 = smov 96  }
 0x106   : > { %1000 = vperm.xlu1 %3827, %v885_v42   ;;  %3798 = vmatprep.subr.mxu1 %v1097_v50  ;;  %v1294_v12 = vld [vmem:[#allocation4 + $0x10] sm:$0xff] }
 0x107   : > { %3531 = vmatprep.subr.mxu0 %v1097_v50 }
 0x108   : > { %3800 = vmatpush3.msra.mxu1 %v1097_v50  ;;  %3532 = vmatpush3.msra.mxu0 %v1097_v50 }
 0x109   : > { %907 = vperm.xlu0 %3825, %v886_v48   ;;  %3740 = vmatprep.subr.bf16.mxu1 %v4290_v53 }
 0x10a   : > { %1003 = vperm.xlu1 %3827, %v886_v48  }
 0x10d   : > { %910 = vperm.xlu0 %3825, %v887_v54  }
 0x10e   : > { %1006 = vperm.xlu1 %3827, %v887_v54  }
 0x111   : > { %913 = vperm.xlu0 %3825, %v888_v55  }
 0x112   : > { %1009 = vperm.xlu1 %3827, %v888_v55  }
 0x115   : > { %916 = vperm.xlu0 %3825, %v889_v56  }
 0x116   : > { %1012 = vperm.xlu1 %3827, %v889_v56  }
 0x119   : > { %919 = vperm.xlu0 %3825, %v890_v57  }
 0x11a   : > { %1015 = vperm.xlu1 %3827, %v890_v57  }
 0x11d   : > { %922 = vperm.xlu0 %3825, %v891_v58  }
 0x11e   : > { %1018 = vperm.xlu1 %3827, %v891_v58  }
 0x121   : > { %925 = vperm.xlu0 %3825, %v892_v59  }
 0x122   : > { %1021 = vperm.xlu1 %3827, %v892_v59  }
 0x125   : > { %928 = vperm.xlu0 %3825, %v893_v60  }
 0x126   : > { %1024 = vperm.xlu1 %3827, %v893_v60  }
 0x129   : > { %931 = vperm.xlu0 %3825, %v894_v61  }
 0x12a   : > { %1027 = vperm.xlu1 %3827, %v894_v61  }
 0x12d   : > { %934 = vperm.xlu0 %3825, %v895_v62  }
 0x12e   : > { %1030 = vperm.xlu1 %3827, %v895_v62  }
 0x131   : > { %937 = vperm.xlu0 %3825, %v896_v63  }
 0x132   : > { %1033 = vperm.xlu1 %3827, %v896_v63  }
 0x135   : > { %940 = vperm.xlu0 %3825, %v897_v0  }
 0x136   : > { %1036 = vperm.xlu1 %3827, %v897_v0  }
 0x139   : > { %943 = vperm.xlu0 %3825, %v898_v1  }
 0x13a   : > { %1039 = vperm.xlu1 %3827, %v898_v1  }
 0x13d   : > { %3828 = vset.pattern.permute.xlu0 %v4054_v47 }
 0x13e   : > { %1042 = vperm.xlu0 %3828, %v4284_v41   ;;  %1045 = vperm.xlu1 %3827, %v900_v44  }
 0x180   : > { %v947_v4 = vpop.permute.xlu0 %946  ;;  %v905_v5 = vpop.permute.xlu1 %904 }
 0x181   : > { %vm965_vm6 = vcmp.eq.s32.totalorder %v947_v4, %v4306_v3  ;;  %vm951_vm7 = vcmp.eq.s32.totalorder %v905_v5, %v4306_v3 }
 0x182   : > { %v4311_v7 = vsel %vm965_vm6, 1.0, %v5138_v6  ;;  %v4314_v8 = vsel %vm951_vm7, 1.0, %v5138_v6 }
 0x183   : > { %5148 = vst [vmem:[#allocation7_spill] sm:$0xff] %v4311_v7  ;;  %3554 = vmatprep.mubr.msk.f32.mxu1 %vm1098_vm5, %v4311_v7  ;;  %3533 = vmatprep.mubr.msk.f32.mxu0 %vm1098_vm5, %v4314_v8 }
 0x184   : > { %v950_v9 = vpop.permute.xlu0 %949 }
 0x185   : > { %vm966_vm8 = vcmp.eq.s32.totalorder %v950_v9, %v4306_v3  ;;  %v1001_v10 = vpop.permute.xlu1 %1000 }
 0x186   : > { %v4322_v11 = vsel %vm966_vm8, 1.0, %v5138_v6  ;;  %vm1047_vm9 = vcmp.eq.s32.totalorder %v1001_v10, %v4306_v3 }
 0x187   : > { %5149 = vst [vmem:[#allocation8_spill] sm:$0xff] %v4322_v11  ;;  %v3215_v13 = vsel %vm1047_vm9, 1.0, %v5138_v6  ;;  %3555 = vmatmul.mubr.msk.f32.vlgmr.msra.gmra.mrb[0].mxu1 %vm1098_vm5, %v4322_v11 }
 0x188   : > { %3742 = vmatpush3.bf16.msra.mxu1 %v4290_v53  ;;  %v908_v14 = vpop.permute.xlu0 %907  ;;  %3563 = vmatprep.mubr.msk.f32.mxu1 %vm1098_vm5, %v3215_v13 }
 0x189   : > { %vm952_vm10 = vcmp.eq.s32.totalorder %v908_v14, %v4306_v3  ;;  %v1004_v15 = vpop.permute.xlu1 %1003  ;;  %3561 = vmatprep.subr.mxu1 %v1294_v12 }
 0x18a   : > { %v4332_v16 = vsel %vm952_vm10, 1.0, %v5138_v6  ;;  %vm1048_vm11 = vcmp.eq.s32.totalorder %v1004_v15, %v4306_v3 }
 0x18b   : > { %v3216_v17 = vsel %vm1048_vm11, 1.0, %v5138_v6  ;;  %3534 = vmatmul.mubr.msk.f32.vlgmr.msra.gmra.mrb[0].mxu0 %vm1098_vm5, %v4332_v16 }
 0x18c   : > { %3562 = vmatpush3.msra.mxu1 %v1294_v12  ;;  %v911_v18 = vpop.permute.xlu0 %910 }
 0x18d   : > { %vm953_vm12 = vcmp.eq.s32.totalorder %v911_v18, %v4306_v3  ;;  %3564 = vmatmul.mubr.msk.f32.vlgmr.msra.gmra.mrb[2].mxu1 %vm1098_vm5, %v3216_v17  ;;  %v1007_v19 = vpop.permute.xlu1 %1006 }
 0x18e   : > { %v4341_v20 = vsel %vm953_vm12, 1.0, %v5138_v6  ;;  %vm1049_vm13 = vcmp.eq.s32.totalorder %v1007_v19, %v4306_v3 }
 0x18f   : > { %v3217_v21 = vsel %vm1049_vm13, 1.0, %v5138_v6  ;;  %3536 = vmatprep.mubr.msk.f32.mxu0 %vm1098_vm5, %v4341_v20 }
 0x190   : > { %v914_v22 = vpop.permute.xlu0 %913  ;;  %3566 = vmatprep.mubr.msk.f32.mxu1 %vm1098_vm5, %v3217_v21 }
 0x191   : > { %vm954_vm14 = vcmp.eq.s32.totalorder %v914_v22, %v4306_v3  ;;  %v1010_v23 = vpop.permute.xlu1 %1009 }
 0x192   : > { %v4350_v24 = vsel %vm954_vm14, 1.0, %v5138_v6  ;;  %vm1050_vm15 = vcmp.eq.s32.totalorder %v1010_v23, %v4306_v3 }
 0x193   : > { %v3218_v25 = vsel %vm1050_vm15, 1.0, %v5138_v6  ;;  %3537 = vmatmul.mubr.msk.f32.gmra.mrb[2].mxu0 %vm1098_vm5, %v4350_v24 }
 0x194   : > { %v917_v26 = vpop.permute.xlu0 %916  ;;  %3567 = vmatmul.mubr.msk.f32.gmra.mrb[4].mxu1 %vm1098_vm5, %v3218_v25 }
 0x195   : > { %vm955_vm0 = vcmp.eq.s32.totalorder %v917_v26, %v4306_v3  ;;  %v1013_v27 = vpop.permute.xlu1 %1012 }
 0x196   : > { %v4359_v28 = vsel %vm955_vm0, 1.0, %v5138_v6  ;;  %vm1051_vm1 = vcmp.eq.s32.totalorder %v1013_v27, %v4306_v3 }
 0x197   : > { %v3219_v29 = vsel %vm1051_vm1, 1.0, %v5138_v6  ;;  %3539 = vmatprep.mubr.msk.f32.mxu0 %vm1098_vm5, %v4359_v28 }
 0x198   : > { %v920_v30 = vpop.permute.xlu0 %919  ;;  %3569 = vmatprep.mubr.msk.f32.mxu1 %vm1098_vm5, %v3219_v29 }
 0x199   : > { %vm956_vm2 = vcmp.eq.s32.totalorder %v920_v30, %v4306_v3  ;;  %v1016_v31 = vpop.permute.xlu1 %1015 }
 0x19a   : > { %v4368_v32 = vsel %vm956_vm2, 1.0, %v5138_v6  ;;  %vm1052_vm3 = vcmp.eq.s32.totalorder %v1016_v31, %v4306_v3 }
 0x19b   : > { %v3220_v33 = vsel %vm1052_vm3, 1.0, %v5138_v6  ;;  %3540 = vmatmul.mubr.msk.f32.gmra.mrb[4].mxu0 %vm1098_vm5, %v4368_v32 }
 0x19c   : > { %v923_v34 = vpop.permute.xlu0 %922  ;;  %3570 = vmatmul.mubr.msk.f32.gmra.mrb[6].mxu1 %vm1098_vm5, %v3220_v33 }
 0x19d   : > { %vm957_vm4 = vcmp.eq.s32.totalorder %v923_v34, %v4306_v3  ;;  %v1019_v35 = vpop.permute.xlu1 %1018 }
 0x19e   : > { %v4377_v36 = vsel %vm957_vm4, 1.0, %v5138_v6  ;;  %vm1053_vm6 = vcmp.eq.s32.totalorder %v1019_v35, %v4306_v3 }
 0x19f   : > { %v3221_v37 = vsel %vm1053_vm6, 1.0, %v5138_v6  ;;  %3542 = vmatprep.mubr.msk.f32.mxu0 %vm1098_vm5, %v4377_v36 }
 0x1a0   : > { %v926_v38 = vpop.permute.xlu0 %925  ;;  %3572 = vmatprep.mubr.msk.f32.mxu1 %vm1098_vm5, %v3221_v37 }
 0x1a1   : > { %vm958_vm7 = vcmp.eq.s32.totalorder %v926_v38, %v4306_v3  ;;  %v1022_v39 = vpop.permute.xlu1 %1021 }
 0x1a2   : > { %v4386_v40 = vsel %vm958_vm7, 1.0, %v5138_v6  ;;  %vm1054_vm8 = vcmp.eq.s32.totalorder %v1022_v39, %v4306_v3 }
 0x1a3   : > { %v3222_v41 = vsel %vm1054_vm8, 1.0, %v5138_v6  ;;  %3543 = vmatmul.mubr.msk.f32.gmra.mrb[6].mxu0 %vm1098_vm5, %v4386_v40  ;;  %vm1834_vm8 = vcmask 261120  }
 0x1a4   : > { %v929_v42 = vpop.permute.xlu0 %928  ;;  %3573 = vmatmul.mubr.msk.f32.gmra.mrb[8].mxu1 %vm1098_vm5, %v3222_v41 }
 0x1a5   : > { %vm959_vm9 = vcmp.eq.s32.totalorder %v929_v42, %v4306_v3  ;;  %v1025_v43 = vpop.permute.xlu1 %1024 }
 0x1a6   : > { %v4395_v44 = vsel %vm959_vm9, 1.0, %v5138_v6  ;;  %vm1055_vm10 = vcmp.eq.s32.totalorder %v1025_v43, %v4306_v3  ;;  %vm4059_vm9 = vmmov 0  }
 0x1a7   : > { %v3223_v45 = vsel %vm1055_vm10, 1.0, %v5138_v6  ;;  %3545 = vmatprep.mubr.msk.f32.mxu0 %vm1098_vm5, %v4395_v44  ;;  %vm2703_vm10 = vcmask 294144  }
 0x1a8   : > { %v932_v46 = vpop.permute.xlu0 %931  ;;  %3575 = vmatprep.mubr.msk.f32.mxu1 %vm1098_vm5, %v3223_v45 }
 0x1a9   : > { %vm960_vm11 = vcmp.eq.s32.totalorder %v932_v46, %v4306_v3  ;;  %v1028_v47 = vpop.permute.xlu1 %1027 }
 0x1aa   : > { %v4404_v48 = vsel %vm960_vm11, 1.0, %v5138_v6  ;;  %vm1056_vm12 = vcmp.eq.s32.totalorder %v1028_v47, %v4306_v3  ;;  %vm4061_vm11 = vmmov (!%p3348_p5), 0  }
 0x1ab   : > { %v3224_v49 = vsel %vm1056_vm12, 1.0, %v5138_v6  ;;  %3546 = vmatmul.mubr.msk.f32.gmra.mrb[8].mxu0 %vm1098_vm5, %v4404_v48  ;;  %vm3100_vm12 = vcmask (!%p3348_p5), 130048  }
 0x1ac   : > { %v935_v50 = vpop.permute.xlu0 %934  ;;  %3576 = vmatmul.mubr.msk.f32.gmra.mrb[10].mxu1 %vm1098_vm5, %v3224_v49 }
 0x1ad   : > { %vm961_vm13 = vcmp.eq.s32.totalorder %v935_v50, %v4306_v3  ;;  %v1031_v51 = vpop.permute.xlu1 %1030 }
 0x1ae   : > { %v4413_v52 = vsel %vm961_vm13, 1.0, %v5138_v6  ;;  %vm1057_vm14 = vcmp.eq.s32.totalorder %v1031_v51, %v4306_v3 }
 0x1af   : > { %v3225_v53 = vsel %vm1057_vm14, 1.0, %v5138_v6  ;;  %3548 = vmatprep.mubr.msk.f32.mxu0 %vm1098_vm5, %v4413_v52 }
 0x1b0   : > { %v938_v54 = vpop.permute.xlu0 %937  ;;  %3578 = vmatprep.mubr.msk.f32.mxu1 %vm1098_vm5, %v3225_v53 }
 0x1b1   : > { %vm962_vm15 = vcmp.eq.s32.totalorder %v938_v54, %v4306_v3  ;;  %v1034_v55 = vpop.permute.xlu1 %1033 }
 0x1b2   : > { %v4422_v56 = vsel %vm962_vm15, 1.0, %v5138_v6  ;;  %vm1058_vm0 = vcmp.eq.s32.totalorder %v1034_v55, %v4306_v3 }
 0x1b3   : > { %v3226_v57 = vsel %vm1058_vm0, 1.0, %v5138_v6  ;;  %3549 = vmatmul.mubr.msk.f32.gmra.mrb[10].mxu0 %vm1098_vm5, %v4422_v56 }
 0x1b4   : > { %v941_v58 = vpop.permute.xlu0 %940  ;;  %3579 = vmatmul.mubr.msk.f32.gmra.mrb[12].mxu1 %vm1098_vm5, %v3226_v57 }
 0x1b5   : > { %vm963_vm1 = vcmp.eq.s32.totalorder %v941_v58, %v4306_v3  ;;  %v1037_v59 = vpop.permute.xlu1 %1036 }
 0x1b6   : > { %v4431_v60 = vsel %vm963_vm1, 1.0, %v5138_v6  ;;  %vm1059_vm2 = vcmp.eq.s32.totalorder %v1037_v59, %v4306_v3 }
 0x1b7   : > { %v3227_v61 = vsel %vm1059_vm2, 1.0, %v5138_v6  ;;  %3551 = vmatprep.mubr.msk.f32.mxu0 %vm1098_vm5, %v4431_v60 }
 0x1b8   : > { %v944_v62 = vpop.permute.xlu0 %943  ;;  %3581 = vmatprep.mubr.msk.f32.mxu1 %vm1098_vm5, %v3227_v61 }
 0x1b9   : > { %vm964_vm3 = vcmp.eq.s32.totalorder %v944_v62, %v4306_v3  ;;  %v1040_v63 = vpop.permute.xlu1 %1039 }
 0x1ba   : > { %v4440_v0 = vsel %vm964_vm3, 1.0, %v5138_v6  ;;  %vm1060_vm4 = vcmp.eq.s32.totalorder %v1040_v63, %v4306_v3 }
 0x1bb   : > { %v3228_v1 = vsel %vm1060_vm4, 1.0, %v5138_v6  ;;  %3552 = vmatmul.mubr.msk.f32.gmra.mrb[12].mxu0 %vm1098_vm5, %v4440_v0 }
 0x1bc   : > { %3582 = vmatmul.mubr.msk.f32.gmra.mrb[14].mxu1 %vm1098_vm5, %v3228_v1 }
 0x1bd   : > { %v1043_v2 = vpop.permute.xlu0 %1042  ;;  %v1046_v4 = vpop.permute.xlu1 %1045 }
 0x1be   : > { %vm1061_vm6 = vcmp.eq.s32.totalorder %v1043_v2, %v4306_v3  ;;  %vm1062_vm7 = vcmp.eq.s32.totalorder %v1046_v4, %v4306_v3 }
 0x1bf   : > { %v3229_v5 = vsel %vm1061_vm6, 1.0, %v5138_v6  ;;  %v3230_v9 = vsel %vm1062_vm7, 1.0, %v5138_v6 }
 0x1c0   : > { %3584 = vmatprep.mubr.msk.f32.mxu1 %vm1098_vm5, %v3229_v5 }
 0x1c1   : > { %3585 = vmatmul.mubr.msk.f32.gmra.mrb[16].mxu1 %vm1098_vm5, %v3230_v9  ;;  %vm1584_vm5 = vcmask 23552  }
 0x25a   : > { %v4453_v10 = vpop.f32.mrb[0].mxu1 }
 0x25b   : > { %v4455_v12 = vpop.f32.mrb[1].mxu1 }
 0x25e   : > { %v3535_v13 = vpop.f32.mrb[0].mxu0 }
 0x25f   : > { %v1213_v14 = vpop.f32.mrb[1].mxu0 }
 0x260   : > { %v3565_v15 = vpop.f32.mrb[2].mxu1 }
 0x261   : > { %v4457_v17 = vsub.f32 %v3535_v13, %v3565_v15  ;;  %v4459_v18 = vadd.f32 %v3565_v15, %v3535_v13  ;;  %v1409_v3 = vpop.f32.mrb[3].mxu1 }
 0x262   : > { %v4461_v19 = vsub.f32 %v1213_v14, %v1409_v3  ;;  %v4463_v21 = vadd.f32 %v1409_v3, %v1213_v14 }
 0x263   : > { %v1505_v22 = vmul.f32 %v4457_v17, %v4457_v17 }
 0x264   : > { %v1504_v23 = vmul.f32 %v4461_v19, %v4461_v19 }
 0x265   : > { %1538 = vrot.lane.b32.xlu0 %v1505_v22, %s4056_s20 }
 0x266   : > { %1536 = vrot.lane.b32.xlu1 %v1504_v23, %s4056_s20  ;;  %v3538_v25 = vpop.f32.mrb[2].mxu0 }
 0x267   : > { %v1223_v26 = vpop.f32.mrb[3].mxu0  ;;  %v3568_v27 = vpop.f32.mrb[4].mxu1 }
 0x268   : > { %v4471_v29 = vsub.f32 %v3538_v25, %v3568_v27  ;;  %v4473_v30 = vadd.f32 %v3568_v27, %v3538_v25  ;;  %v1419_v31 = vpop.f32.mrb[5].mxu1 }
 0x269   : > { %v4475_v33 = vsub.f32 %v1223_v26, %v1419_v31  ;;  %v4477_v34 = vadd.f32 %v1419_v31, %v1223_v26 }
 0x26a   : > { %v1507_v35 = vmul.f32 %v4471_v29, %v4471_v29 }
 0x26b   : > { %v1506_v37 = vmul.f32 %v4475_v33, %v4475_v33 }
 0x26c   : > { %1542 = vrot.lane.b32.xlu0 %v1507_v35, %s4056_s20 }
 0x26d   : > { %1540 = vrot.lane.b32.xlu1 %v1506_v37, %s4056_s20 }
 0x26e   : > { %v3541_v38 = vpop.f32.mrb[4].mxu0 }
 0x26f   : > { %v1233_v39 = vpop.f32.mrb[5].mxu0  ;;  %v3571_v41 = vpop.f32.mrb[6].mxu1 }
 0x270   : > { %v4485_v42 = vsub.f32 %v3541_v38, %v3571_v41  ;;  %v4487_v43 = vadd.f32 %v3571_v41, %v3541_v38  ;;  %v1429_v45 = vpop.f32.mrb[7].mxu1 }
 0x271   : > { %v4489_v46 = vsub.f32 %v1233_v39, %v1429_v45  ;;  %v4491_v47 = vadd.f32 %v1429_v45, %v1233_v39 }
 0x272   : > { %v1509_v49 = vmul.f32 %v4485_v42, %v4485_v42 }
 0x273   : > { %v1508_v50 = vmul.f32 %v4489_v46, %v4489_v46 }
 0x274   : > { %1546 = vrot.lane.b32.xlu0 %v1509_v49, %s4056_s20 }
 0x275   : > { %1544 = vrot.lane.b32.xlu1 %v1508_v50, %s4056_s20 }
 0x276   : > { %v3544_v51 = vpop.f32.mrb[6].mxu0 }
 0x277   : > { %v1243_v53 = vpop.f32.mrb[7].mxu0  ;;  %v3574_v54 = vpop.f32.mrb[8].mxu1 }
 0x278   : > { %v4499_v55 = vsub.f32 %v3544_v51, %v3574_v54  ;;  %v4501_v57 = vadd.f32 %v3574_v54, %v3544_v51  ;;  %v1439_v58 = vpop.f32.mrb[9].mxu1 }
 0x279   : > { %v4503_v59 = vsub.f32 %v1243_v53, %v1439_v58  ;;  %v4505_v61 = vadd.f32 %v1439_v58, %v1243_v53 }
 0x27a   : > { %v1511_v62 = vmul.f32 %v4499_v55, %v4499_v55 }
 0x27b   : > { %v1510_v63 = vmul.f32 %v4503_v59, %v4503_v59 }
 0x27c   : > { %1550 = vrot.lane.b32.xlu0 %v1511_v62, %s4056_s20 }
 0x27d   : > { %1548 = vrot.lane.b32.xlu1 %v1510_v63, %s4056_s20 }
 0x27e   : > { %v3547_v1 = vpop.f32.mrb[8].mxu0 }
 0x27f   : > { %v1253_v2 = vpop.f32.mrb[9].mxu0  ;;  %v3577_v4 = vpop.f32.mrb[10].mxu1 }
 0x280   : > { %v4513_v5 = vsub.f32 %v3547_v1, %v3577_v4  ;;  %v4515_v9 = vadd.f32 %v3577_v4, %v3547_v1  ;;  %v1449_v13 = vpop.f32.mrb[11].mxu1 }
 0x281   : > { %v4517_v14 = vsub.f32 %v1253_v2, %v1449_v13  ;;  %v4519_v15 = vadd.f32 %v1449_v13, %v1253_v2 }
 0x282   : > { %v1513_v3 = vmul.f32 %v4513_v5, %v4513_v5 }
 0x283   : > { %v1512_v22 = vmul.f32 %v4517_v14, %v4517_v14 }
 0x284   : > { %1554 = vrot.lane.b32.xlu0 %v1513_v3, %s4056_s20 }
 0x285   : > { %1552 = vrot.lane.b32.xlu1 %v1512_v22, %s4056_s20 }
 0x286   : > { %v3550_v23 = vpop.f32.mrb[10].mxu0 }
 0x287   : > { %v1263_v25 = vpop.f32.mrb[11].mxu0  ;;  %v3580_v26 = vpop.f32.mrb[12].mxu1 }
 0x288   : > { %v4527_v27 = vsub.f32 %v3550_v23, %v3580_v26  ;;  %v4529_v31 = vadd.f32 %v3580_v26, %v3550_v23  ;;  %v1459_v35 = vpop.f32.mrb[13].mxu1 }
 0x289   : > { %v4531_v37 = vsub.f32 %v1263_v25, %v1459_v35  ;;  %v4533_v38 = vadd.f32 %v1459_v35, %v1263_v25 }
 0x28a   : > { %v1515_v39 = vmul.f32 %v4527_v27, %v4527_v27 }
 0x28b   : > { %v1514_v41 = vmul.f32 %v4531_v37, %v4531_v37 }
 0x28c   : > { %1558 = vrot.lane.b32.xlu0 %v1515_v39, %s4056_s20 }
 0x28d   : > { %1556 = vrot.lane.b32.xlu1 %v1514_v41, %s4056_s20 }
 0x28e   : > { %v3553_v45 = vpop.f32.mrb[12].mxu0 }
 0x28f   : > { %v1273_v49 = vpop.f32.mrb[13].mxu0  ;;  %v3583_v50 = vpop.f32.mrb[14].mxu1 }
 0x290   : > { %v4541_v51 = vsub.f32 %v3553_v45, %v3583_v50  ;;  %v4543_v53 = vadd.f32 %v3583_v50, %v3553_v45  ;;  %v1469_v54 = vpop.f32.mrb[15].mxu1 }
 0x291   : > { %v4545_v58 = vsub.f32 %v1273_v49, %v1469_v54  ;;  %v4547_v62 = vadd.f32 %v1469_v54, %v1273_v49 }
 0x292   : > { %v1517_v63 = vmul.f32 %v4541_v51, %v4541_v51 }
 0x293   : > { %v1516_v1 = vmul.f32 %v4545_v58, %v4545_v58 }
 0x294   : > { %1562 = vrot.lane.b32.xlu0 %v1517_v63, %s4056_s20  ;;  %v3586_v2 = vpop.f32.mrb[16].mxu1 }
 0x295   : > { %v4555_v4 = vsub.f32 %v4453_v10, %v3586_v2  ;;  %v4558_v13 = vadd.f32 %v3586_v2, %v4453_v10  ;;  %1560 = vrot.lane.b32.xlu1 %v1516_v1, %s4056_s20  ;;  %v1479_v3 = vpop.f32.mrb[17].mxu1 }
 0x296   : > { %v4562_v22 = vsub.f32 %v4455_v12, %v1479_v3  ;;  %v4565_v23 = vadd.f32 %v1479_v3, %v4455_v12 }
 0x297   : > { %v1519_v25 = vmul.f32 %v4555_v4, %v4555_v4 }
 0x298   : > { %v1518_v26 = vmul.f32 %v4562_v22, %v4562_v22 }
 0x299   : > { %1566 = vrot.lane.b32.xlu0 %v1519_v25, %s4056_s20 }
 0x29a   : > { %1564 = vrot.lane.b32.xlu1 %v1518_v26, %s4056_s20 }
 0x2d7   : > { %v1539_v10 = vpop.permute.xlu0 %1538 }
 0x2d8   : > { %v1537_v35 = vpop.permute.xlu1 %1536  ;;  %v1588_v39 = vsel %vm1584_vm5, %v1539_v10, 0.0 }
 0x2d9   : > { %1589 = vadd.xlane.f32.xlu0 %v1588_v39  ;;  %v1585_v41 = vsel %vm1584_vm5, %v1537_v35, 0.0 }
 0x2da   : > { %1586 = vadd.xlane.f32.xlu1 %v1585_v41 }
 0x2de   : > { %v1543_v12 = vpop.permute.xlu0 %1542 }
 0x2df   : > { %v1541_v45 = vpop.permute.xlu1 %1540  ;;  %v1594_v49 = vsel %vm1584_vm5, %v1543_v12, 0.0 }
 0x2e0   : > { %1595 = vadd.xlane.f32.xlu1 %v1594_v49  ;;  %v1591_v50 = vsel %vm1584_vm5, %v1541_v45, 0.0 }
 0x2e1   : > { %1592 = vadd.xlane.f32.xlu0 %v1591_v50 }
 0x2e6   : > { %v1547_v54 = vpop.permute.xlu0 %1546 }
 0x2e7   : > { %v1545_v63 = vpop.permute.xlu1 %1544  ;;  %v1600_v1 = vsel %vm1584_vm5, %v1547_v54, 0.0 }
 0x2e8   : > { %1601 = vadd.xlane.f32.xlu1 %v1600_v1  ;;  %v1597_v2 = vsel %vm1584_vm5, %v1545_v63, 0.0  ;;  %v1823_v63 = vld [vmem:[%s5122_s7] sm:$0xff]  ;;  %v1824_v1 = vld [vmem:[%s5122_s7 + $0x8] sm:$0xff] }
 0x2e9   : > { %1598 = vadd.xlane.f32.xlu0 %v1597_v2  ;;  %v3743_v2 = vpack.c.bf16 %v1824_v1, %v1823_v63 }
 0x2eb   : > { %3744 = vmatprep.subr.bf16.mxu0 %v3743_v2 }
 0x2ec   : > { %3746 = vmatpush3.bf16.msra.mxu0 %v3743_v2 }
 0x2ee   : > { %v1551_v3 = vpop.permute.xlu0 %1550 }
 0x2ef   : > { %v1549_v25 = vpop.permute.xlu1 %1548  ;;  %v1606_v26 = vsel %vm1584_vm5, %v1551_v3, 0.0  ;;  %v1825_v3 = vld [vmem:[%s5122_s7 + $0x10] sm:$0xff] }
 0x2f0   : > { %1607 = vadd.xlane.f32.xlu1 %v1606_v26  ;;  %v1603_v10 = vsel %vm1584_vm5, %v1549_v25, 0.0  ;;  %v1826_v25 = vld [vmem:[%s5122_s7 + $0x18] sm:$0xff] }
 0x2f1   : > { %1604 = vadd.xlane.f32.xlu0 %v1603_v10  ;;  %v3747_v26 = vpack.c.bf16 %v1826_v25, %v1825_v3  ;;  %v4610_v3 = vld [vmem:[%s5121_s6] ss:$0 sm:$0xff] }
 0x2f3   : > { %3748 = vmatprep.subr.bf16.mxu0 %v3747_v26 }
 0x2f4   : > { %3750 = vmatpush3.bf16.msra.mxu0 %v3747_v26 }
 0x2f6   : > { %v1555_v35 = vpop.permute.xlu0 %1554 }
 0x2f7   : > { %v1553_v39 = vpop.permute.xlu1 %1552  ;;  %v1612_v41 = vsel %vm1584_vm5, %v1555_v35, 0.0 }
 0x2f8   : > { %1613 = vadd.xlane.f32.xlu1 %v1612_v41  ;;  %v1609_v12 = vsel %vm1584_vm5, %v1553_v39, 0.0 }
 0x2f9   : > { %1610 = vadd.xlane.f32.xlu0 %v1609_v12 }
 0x2fe   : > { %v1559_v45 = vpop.permute.xlu0 %1558 }
 0x2ff   : > { %v1557_v49 = vpop.permute.xlu1 %1556  ;;  %v1618_v50 = vsel %vm1584_vm5, %v1559_v45, 0.0 }
 0x300   : > { %1619 = vadd.xlane.f32.xlu1 %v1618_v50  ;;  %v1615_v54 = vsel %vm1584_vm5, %v1557_v49, 0.0 }
 0x301   : > { %1616 = vadd.xlane.f32.xlu0 %v1615_v54  ;;  %v4604_v54 = vld [vmem:[%s5120_s5] ss:$0 sm:$0xff] }
 0x306   : > { %v1563_v10 = vpop.permute.xlu0 %1562 }
 0x307   : > { %v1561_v35 = vpop.permute.xlu1 %1560  ;;  %v1624_v39 = vsel %vm1584_vm5, %v1563_v10, 0.0 }
 0x308   : > { %1625 = vadd.xlane.f32.xlu1 %v1624_v39  ;;  %v1621_v41 = vsel %vm1584_vm5, %v1561_v35, 0.0 }
 0x309   : > { %1622 = vadd.xlane.f32.xlu0 %v1621_v41 }
 0x30b   : > { %v1567_v12 = vpop.permute.xlu0 %1566 }
 0x30c   : > { %v1565_v45 = vpop.permute.xlu1 %1564  ;;  %v1630_v49 = vsel %vm1584_vm5, %v1567_v12, 0.0 }
 0x30d   : > { %1631 = vadd.xlane.f32.xlu1 %v1630_v49  ;;  %v1627_v50 = vsel %vm1584_vm5, %v1565_v45, 0.0 }
 0x30e   : > { %1628 = vadd.xlane.f32.xlu0 %v1627_v50 }
 0x366   : > { %v1590_v63 = vpop.xlane.xlu0 %1589 }
 0x367   : > { %v1657_v1 = vmul.f32 %v4604_v54, %v1590_v63  ;;  %v1587_v2 = vpop.xlane.xlu1 %1586 }
 0x368   : > { %v1656_v25 = vmul.f32 %v4604_v54, %v1587_v2 }
 0x369   : > { %v1673_v26 = vadd.f32 %v1657_v1, %v4459_v18 }
 0x36a   : > { %v1672_v10 = vadd.f32 %v1656_v25, %v4463_v21 }
 0x36b   : > { %v4616_v35 = vadd.f32 %v4610_v3, %v1673_v26 }
 0x36c   : > { %v1695_v39 = vadd.f32 %v4610_v3, %v1672_v10 }
 0x36d   : > { %v3266_v41 = vmul.f32 -1.442695, %v4616_v35  ;;  %v1596_v12 = vpop.xlane.xlu1 %1595 }
 0x36e   : > { %v3265_v45 = vmul.f32 -1.442695, %v1695_v39  ;;  %v1659_v49 = vmul.f32 %v4604_v54, %v1596_v12  ;;  %v1593_v50 = vpop.xlane.xlu0 %1592 }
 0x36f   : > { %3829 = vpow2.f32 %v3266_v41  ;;  %v1658_v63 = vmul.f32 %v4604_v54, %v1593_v50 }
 0x370   : > { %3831 = vpow2.f32 %v3265_v45  ;;  %v1675_v18 = vadd.f32 %v1659_v49, %v4473_v30 }
 0x371   : > { %v1674_v21 = vadd.f32 %v1658_v63, %v4477_v34 }
 0x372   : > { %v4625_v1 = vadd.f32 %v4610_v3, %v1675_v18 }
 0x373   : > { %v4628_v2 = vadd.f32 %v4610_v3, %v1674_v21 }
 0x374   : > { %v3268_v25 = vmul.f32 -1.442695, %v4625_v1 }
 0x375   : > { %v3267_v26 = vmul.f32 -1.442695, %v4628_v2  ;;  %v1602_v10 = vpop.xlane.xlu1 %1601 }
 0x376   : > { %3833 = vpow2.f32 %v3268_v25  ;;  %v1661_v41 = vmul.f32 %v4604_v54, %v1602_v10  ;;  %v1599_v12 = vpop.xlane.xlu0 %1598 }
 0x377   : > { %3835 = vpow2.f32 %v3267_v26  ;;  %v1660_v30 = vmul.f32 %v4604_v54, %v1599_v12 }
 0x378   : > { %v1677_v34 = vadd.f32 %v1661_v41, %v4487_v43 }
 0x379   : > { %v3830_v45 = vpop.eup %3829  ;;  %v1676_v49 = vadd.f32 %v1660_v30, %v4491_v47 }
 0x37a   : > { %v3832_v50 = vpop.eup %3831  ;;  %v1760_v63 = vadd.f32 1.0, %v3830_v45  ;;  %v4637_v18 = vadd.f32 %v4610_v3, %v1677_v34 }
 0x37b   : > { %v1759_v21 = vadd.f32 1.0, %v3832_v50  ;;  %v4640_v6 = vadd.f32 %v4610_v3, %v1676_v49 }
 0x37c   : > { %3837 = vrcp.f32 %v1760_v63  ;;  %v3270_v25 = vmul.f32 -1.442695, %v4637_v18 }
 0x37d   : > { %3839 = vrcp.f32 %v1759_v21  ;;  %v3269_v26 = vmul.f32 -1.442695, %v4640_v6  ;;  %v1608_v10 = vpop.xlane.xlu1 %1607 }
 0x37e   : > { %3841 = vpow2.f32 %v3270_v25  ;;  %v1663_v43 = vmul.f32 %v4604_v54, %v1608_v10  ;;  %v1605_v47 = vpop.xlane.xlu0 %1604 }
 0x37f   : > { %3843 = vpow2.f32 %v3269_v26  ;;  %v1662_v41 = vmul.f32 %v4604_v54, %v1605_v47 }
 0x380   : > { %v3834_v12 = vpop.eup %3833  ;;  %v1679_v30 = vadd.f32 %v1663_v43, %v4501_v57 }
 0x381   : > { %v3836_v34 = vpop.eup %3835  ;;  %v1762_v45 = vadd.f32 1.0, %v3834_v12  ;;  %v1678_v49 = vadd.f32 %v1662_v41, %v4505_v61 }
 0x382   : > { %v1761_v50 = vadd.f32 1.0, %v3836_v34  ;;  %v4649_v63 = vadd.f32 %v4610_v3, %v1679_v30 }
 0x383   : > { %3845 = vrcp.f32 %v1762_v45  ;;  %v4652_v21 = vadd.f32 %v4610_v3, %v1678_v49 }
 0x384   : > { %3847 = vrcp.f32 %v1761_v50  ;;  %v3272_v25 = vmul.f32 -1.442695, %v4649_v63 }
 0x385   : > { %v3271_v26 = vmul.f32 -1.442695, %v4652_v21  ;;  %v1614_v10 = vpop.xlane.xlu1 %1613 }
 0x386   : > { %v3838_v47 = vpop.eup %3837  ;;  %3849 = vpow2.f32 %v3272_v25  ;;  %v1665_v57 = vmul.f32 %v4604_v54, %v1614_v10  ;;  %v1611_v43 = vpop.xlane.xlu0 %1610 }
 0x387   : > { %v3840_v61 = vpop.eup %3839  ;;  %3851 = vpow2.f32 %v3271_v26  ;;  %v1664_v41 = vmul.f32 %v4604_v54, %v1611_v43  ;;  %v1808_v49 = vmul.f32 %v3838_v47, %v4616_v35 }
 0x388   : > { %v3842_v12 = vpop.eup %3841  ;;  %v1807_v30 = vmul.f32 %v3840_v61, %v1695_v39  ;;  %v1681_v34 = vadd.f32 %v1665_v57, %v4515_v9 }
 0x389   : > { %v3844_v45 = vpop.eup %3843  ;;  %v1764_v50 = vadd.f32 1.0, %v3842_v12  ;;  %v1680_v11 = vadd.f32 %v1664_v41, %v4519_v15 }
 0x38a   : > { %v1763_v7 = vadd.f32 1.0, %v3844_v45  ;;  %v4662_v25 = vadd.f32 %v4610_v3, %v1681_v34  ;;  %3595 = vmatprep.mubr.msk.f32.mxu0 %vm1834_vm8, %v1807_v30 }
 0x38b   : > { %3853 = vrcp.f32 %v1764_v50  ;;  %v4666_v26 = vadd.f32 %v4610_v3, %v1680_v11  ;;  %3596 = vmatmul.mubr.msk.f32.vlgmr.msra.gmra.mrb[14].mxu0 %vm1834_vm8, %v1808_v49 }
 0x38c   : > { %3855 = vrcp.f32 %v1763_v7  ;;  %v3274_v9 = vmul.f32 -1.442695, %v4662_v25 }
 0x38d   : > { %v3846_v39 = vpop.eup %3845  ;;  %v3273_v35 = vmul.f32 -1.442695, %v4666_v26  ;;  %v1620_v10 = vpop.xlane.xlu1 %1619 }
 0x38e   : > { %v3848_v15 = vpop.eup %3847  ;;  %3857 = vpow2.f32 %v3274_v9  ;;  %v1667_v47 = vmul.f32 %v4604_v54, %v1620_v10  ;;  %v1617_v57 = vpop.xlane.xlu0 %1616  ;;  %v1810_v41 = vmul.f32 %v3846_v39, %v4625_v1 }
 0x38f   : > { %v1809_v43 = vmul.f32 %v3848_v15, %v4628_v2  ;;  %3859 = vpow2.f32 %v3273_v35  ;;  %v1666_v11 = vmul.f32 %v4604_v54, %v1617_v57 }
 0x390   : > { %v3850_v61 = vpop.eup %3849  ;;  %v1683_v7 = vadd.f32 %v1667_v47, %v4529_v31 }
 0x391   : > { %v3852_v12 = vpop.eup %3851  ;;  %v1766_v30 = vadd.f32 1.0, %v3850_v61  ;;  %v1682_v34 = vadd.f32 %v1666_v11, %v4533_v38  ;;  %3598 = vmatprep.mubr.msk.f32.mxu0 %vm1834_vm8, %v1809_v43 }
 0x392   : > { %v1765_v45 = vadd.f32 1.0, %v3852_v12  ;;  %v4679_v49 = vadd.f32 %v4610_v3, %v1683_v7  ;;  %3599 = vmatmul.mubr.msk.f32.gmra.mrb[16].mxu0 %vm1834_vm8, %v1810_v41 }
 0x393   : > { %3861 = vrcp.f32 %v1766_v30  ;;  %v4683_v2 = vadd.f32 %v4610_v3, %v1682_v34 }
 0x394   : > { %3863 = vrcp.f32 %v1765_v45  ;;  %v3276_v1 = vmul.f32 -1.442695, %v4679_v49 }
 0x395   : > { %v3854_v31 = vpop.eup %3853  ;;  %v3275_v50 = vmul.f32 -1.442695, %v4683_v2  ;;  %v1626_v9 = vpop.xlane.xlu1 %1625 }
 0x396   : > { %v3856_v38 = vpop.eup %3855  ;;  %3865 = vpow2.f32 %v3276_v1  ;;  %v1669_v39 = vmul.f32 %v4604_v54, %v1626_v9  ;;  %v1623_v35 = vpop.xlane.xlu0 %1622  ;;  %v1812_v57 = vmul.f32 %v3854_v31, %v4637_v18 }
 0x397   : > { %v1811_v10 = vmul.f32 %v3856_v38, %v4640_v6  ;;  %3867 = vpow2.f32 %v3275_v50  ;;  %v1668_v15 = vmul.f32 %v4604_v54, %v1623_v35 }
 0x398   : > { %v3858_v47 = vpop.eup %3857  ;;  %v1685_v43 = vadd.f32 %v1669_v39, %v4543_v53 }
 0x399   : > { %v3860_v11 = vpop.eup %3859  ;;  %v1768_v61 = vadd.f32 1.0, %v3858_v47  ;;  %v1684_v41 = vadd.f32 %v1668_v15, %v4547_v62  ;;  %3601 = vmatprep.mubr.msk.f32.mxu0 %vm1834_vm8, %v1811_v10 }
 0x39a   : > { %v1767_v7 = vadd.f32 1.0, %v3860_v11  ;;  %v1708_v12 = vadd.f32 %v4610_v3, %v1685_v43  ;;  %3602 = vmatmul.mubr.msk.f32.gmra.mrb[18].mxu0 %vm1834_vm8, %v1812_v57  ;;  %v1632_v6 = vpop.xlane.xlu1 %1631 }
 0x39b   : > { %3869 = vrcp.f32 %v1768_v61  ;;  %v1707_v30 = vadd.f32 %v4610_v3, %v1684_v41  ;;  %v1671_v34 = vmul.f32 %v4604_v54, %v1632_v6  ;;  %v1629_v18 = vpop.xlane.xlu0 %1628 }
 0x39c   : > { %3871 = vrcp.f32 %v1767_v7  ;;  %v3278_v53 = vmul.f32 -1.442695, %v1708_v12  ;;  %v1670_v45 = vmul.f32 %v4604_v54, %v1629_v18 }
 0x39d   : > { %v3862_v1 = vpop.eup %3861  ;;  %v3277_v62 = vmul.f32 -1.442695, %v1707_v30  ;;  %v1687_v31 = vadd.f32 %v1671_v34, %v4558_v13 }
 0x39e   : > { %v3864_v50 = vpop.eup %3863  ;;  %3873 = vpow2.f32 %v3278_v53  ;;  %v1686_v9 = vadd.f32 %v1670_v45, %v4565_v23  ;;  %v1814_v10 = vmul.f32 %v3862_v1, %v4649_v63 }
 0x39f   : > { %v1813_v38 = vmul.f32 %v3864_v50, %v4652_v21  ;;  %3875 = vpow2.f32 %v3277_v62  ;;  %v1710_v39 = vadd.f32 %v4610_v3, %v1687_v31 }
 0x3a0   : > { %v3866_v35 = vpop.eup %3865  ;;  %v1709_v15 = vadd.f32 %v4610_v3, %v1686_v9 }
 0x3a1   : > { %v3868_v47 = vpop.eup %3867  ;;  %v1770_v54 = vadd.f32 1.0, %v3866_v35  ;;  %v3280_v57 = vmul.f32 -1.442695, %v1710_v39  ;;  %3604 = vmatprep.mubr.msk.f32.mxu0 %vm1834_vm8, %v1813_v38 }
 0x3a2   : > { %v1769_v13 = vadd.f32 1.0, %v3868_v47  ;;  %v3279_v43 = vmul.f32 -1.442695, %v1709_v15  ;;  %3605 = vmatmul.mubr.msk.f32.gmra.mrb[20].mxu0 %vm1834_vm8, %v1814_v10  ;;  %v2140_v10 = vld [vmem:[%s5124_s9] sm:$0xff] }
 0x3a3   : > { %3877 = vrcp.f32 %v1770_v54  ;;  %v4734_v54 = vld [vmem:[%s5123_s8] ss:$0 sm:$0xff] }
 0x3a4   : > { %3879 = vrcp.f32 %v1769_v13 }
 0x3a5   : > { %v3870_v23 = vpop.eup %3869  ;;  %3881 = vpow2.f32 %v3280_v57 }
 0x3a6   : > { %v3872_v21 = vpop.eup %3871  ;;  %3883 = vpow2.f32 %v3279_v43  ;;  %v1816_v3 = vmul.f32 %v3870_v23, %v4662_v25 }
 0x3a7   : > { %v1815_v11 = vmul.f32 %v3872_v21, %v4666_v26 }
 0x3a8   : > { %v3874_v63 = vpop.eup %3873 }
 0x3a9   : > { %v3876_v61 = vpop.eup %3875  ;;  %v1772_v41 = vadd.f32 1.0, %v3874_v63  ;;  %3607 = vmatprep.mubr.msk.f32.mxu0 %vm1834_vm8, %v1815_v11 }
 0x3aa   : > { %v1771_v7 = vadd.f32 1.0, %v3876_v61  ;;  %3608 = vmatmul.mubr.msk.f32.gmra.mrb[22].mxu0 %vm1834_vm8, %v1816_v3 }
 0x3ab   : > { %3885 = vrcp.f32 %v1772_v41 }
 0x3ac   : > { %3887 = vrcp.f32 %v1771_v7 }
 0x3ad   : > { %v3878_v6 = vpop.eup %3877 }
 0x3ae   : > { %v3880_v34 = vpop.eup %3879  ;;  %v1818_v26 = vmul.f32 %v3878_v6, %v4679_v49 }
 0x3af   : > { %v3882_v18 = vpop.eup %3881  ;;  %v1817_v53 = vmul.f32 %v3880_v34, %v4683_v2 }
 0x3b0   : > { %v3884_v45 = vpop.eup %3883  ;;  %v1774_v1 = vadd.f32 1.0, %v3882_v18 }
 0x3b1   : > { %v1773_v62 = vadd.f32 1.0, %v3884_v45  ;;  %3610 = vmatprep.mubr.msk.f32.mxu0 %vm1834_vm8, %v1817_v53 }
 0x3b2   : > { %3889 = vrcp.f32 %v1774_v1  ;;  %3611 = vmatmul.mubr.msk.f32.gmra.mrb[24].mxu0 %vm1834_vm8, %v1818_v26 }
 0x3b3   : > { %3891 = vrcp.f32 %v1773_v62 }
 0x3b5   : > { %v3886_v25 = vpop.eup %3885 }
 0x3b6   : > { %v3888_v31 = vpop.eup %3887  ;;  %v1820_v9 = vmul.f32 %v3886_v25, %v1708_v12  ;;  %v2141_v12 = vld [vmem:[%s5124_s9 + $0x8] sm:$0xff] }
 0x3b7   : > { %v1819_v50 = vmul.f32 %v3888_v31, %v1707_v30  ;;  %v3751_v30 = vpack.c.bf16 %v2141_v12, %v2140_v10 }
 0x3b9   : > { %3613 = vmatprep.mubr.msk.f32.mxu0 %vm1834_vm8, %v1819_v50  ;;  %3752 = vmatprep.subr.bf16.mxu1 %v3751_v30 }
 0x3ba   : > { %3614 = vmatmul.mubr.msk.f32.gmra.mrb[26].mxu0 %vm1834_vm8, %v1820_v9  ;;  %3754 = vmatpush3.bf16.msra.mxu1 %v3751_v30 }
 0x3bc   : > { %v3890_v2 = vpop.eup %3889 }
 0x3bd   : > { %v3892_v38 = vpop.eup %3891  ;;  %v1822_v49 = vmul.f32 %v3890_v2, %v1710_v39  ;;  %v2143_v39 = vld [vmem:[%s5124_s9 + $0x18] sm:$0xff] }
 0x3be   : > { %v1821_v35 = vmul.f32 %v3892_v38, %v1709_v15  ;;  %v2142_v15 = vld [vmem:[%s5124_s9 + $0x10] sm:$0xff] }
 0x3bf   : > { %v3755_v47 = vpack.c.bf16 %v2143_v39, %v2142_v15 }
 0x3c0   : > { %3616 = vmatprep.mubr.msk.f32.mxu0 %vm1834_vm8, %v1821_v35 }
 0x3c1   : > { %3617 = vmatmul.mubr.msk.f32.gmra.mrb[28].mxu0 %vm1834_vm8, %v1822_v49  ;;  %3756 = vmatprep.subr.bf16.mxu1 %v3755_v47 }
 0x3c2   : > { %3758 = vmatpush3.bf16.msra.mxu1 %v3755_v47 }
 0x45e   : > { %v3597_v57 = vpop.f32.mrb[14].mxu0 }
 0x45f   : > { %v1955_v13 = vadd.f32 %v3597_v57, %v4734_v54  ;;  %v1949_v43 = vpop.f32.mrb[15].mxu0 }
 0x460   : > { %v1950_v23 = vadd.f32 %v4734_v54, %v1949_v43 }
 0x461   : > { %v3299_v21 = vmul.f32 -1.442695, %v1955_v13 }
 0x462   : > { %v3298_v11 = vmul.f32 -1.442695, %v1950_v23 }
 0x463   : > { %3893 = vpow2.f32 %v3299_v21 }
 0x464   : > { %3895 = vpow2.f32 %v3298_v11 }
 0x465   : > { %v3600_v63 = vpop.f32.mrb[16].mxu0 }
 0x466   : > { %v1965_v3 = vadd.f32 %v3600_v63, %v4734_v54  ;;  %v1959_v61 = vpop.f32.mrb[17].mxu0 }
 0x467   : > { %v1960_v41 = vadd.f32 %v4734_v54, %v1959_v61 }
 0x468   : > { %v3301_v7 = vmul.f32 -1.442695, %v1965_v3 }
 0x469   : > { %v3300_v6 = vmul.f32 -1.442695, %v1960_v41 }
 0x46a   : > { %3897 = vpow2.f32 %v3301_v7 }
 0x46b   : > { %3899 = vpow2.f32 %v3300_v6 }
 0x46d   : > { %v3894_v34 = vpop.eup %3893  ;;  %v3603_v18 = vpop.f32.mrb[18].mxu0 }
 0x46e   : > { %v3896_v53 = vpop.eup %3895  ;;  %v2077_v45 = vadd.f32 1.0, %v3894_v34  ;;  %v4741_v26 = vadd.f32 %v3603_v18, %v4734_v54  ;;  %v1969_v1 = vpop.f32.mrb[19].mxu0 }
 0x46f   : > { %v2076_v62 = vadd.f32 1.0, %v3896_v53  ;;  %v4744_v25 = vadd.f32 %v4734_v54, %v1969_v1 }
 0x470   : > { %3901 = vrcp.f32 %v2077_v45  ;;  %v3303_v31 = vmul.f32 -1.442695, %v4741_v26 }
 0x471   : > { %3903 = vrcp.f32 %v2076_v62  ;;  %v3302_v50 = vmul.f32 -1.442695, %v4744_v25 }
 0x472   : > { %3905 = vpow2.f32 %v3303_v31 }
 0x473   : > { %3907 = vpow2.f32 %v3302_v50 }
 0x474   : > { %v3898_v9 = vpop.eup %3897 }
 0x475   : > { %v3900_v2 = vpop.eup %3899  ;;  %v2079_v38 = vadd.f32 1.0, %v3898_v9  ;;  %v3606_v35 = vpop.f32.mrb[20].mxu0 }
 0x476   : > { %v2078_v49 = vadd.f32 1.0, %v3900_v2  ;;  %v4749_v10 = vadd.f32 %v3606_v35, %v4734_v54  ;;  %v1979_v12 = vpop.f32.mrb[21].mxu0 }
 0x477   : > { %3909 = vrcp.f32 %v2079_v38  ;;  %v4752_v30 = vadd.f32 %v4734_v54, %v1979_v12 }
 0x478   : > { %3911 = vrcp.f32 %v2078_v49  ;;  %v3305_v15 = vmul.f32 -1.442695, %v4749_v10 }
 0x479   : > { %v3304_v39 = vmul.f32 -1.442695, %v4752_v30 }
 0x47a   : > { %v3902_v47 = vpop.eup %3901  ;;  %3913 = vpow2.f32 %v3305_v15 }
 0x47b   : > { %v3904_v57 = vpop.eup %3903  ;;  %v2125_v43 = vmul.f32 %v3902_v47, %v1955_v13  ;;  %3915 = vpow2.f32 %v3304_v39 }
 0x47c   : > { %v3906_v21 = vpop.eup %3905  ;;  %v2124_v11 = vmul.f32 %v3904_v57, %v1950_v23 }
 0x47d   : > { %v3908_v63 = vpop.eup %3907  ;;  %2544 = vst.msk [vmem:[#allocation6 + $0x8] sm:$0xff] %vm1834_vm8, %v2125_v43  ;;  %v2081_v61 = vadd.f32 1.0, %v3906_v21  ;;  %v3609_v7 = vpop.f32.mrb[22].mxu0 }
 0x47e   : > { %2543 = vst.msk [vmem:[#allocation6] sm:$0xff] %vm1834_vm8, %v2124_v11  ;;  %v2080_v6 = vadd.f32 1.0, %v3908_v63  ;;  %v4759_v34 = vadd.f32 %v3609_v7, %v4734_v54  ;;  %3627 = vmatprep.mubr.msk.f32.mxu1 %vm1834_vm8, %v2124_v11  ;;  %v1989_v18 = vpop.f32.mrb[23].mxu0 }
 0x47f   : > { %3917 = vrcp.f32 %v2081_v61  ;;  %v4763_v13 = vadd.f32 %v4734_v54, %v1989_v18  ;;  %3628 = vmatmul.mubr.msk.f32.vlgmr.msra.gmra.mrb[18].mxu1 %vm1834_vm8, %v2125_v43 }
 0x480   : > { %3919 = vrcp.f32 %v2080_v6  ;;  %v3307_v23 = vmul.f32 -1.442695, %v4759_v34 }
 0x481   : > { %v3910_v53 = vpop.eup %3909  ;;  %v3306_v45 = vmul.f32 -1.442695, %v4763_v13 }
 0x482   : > { %v3912_v1 = vpop.eup %3911  ;;  %v2127_v62 = vmul.f32 %v3910_v53, %v1965_v3  ;;  %3921 = vpow2.f32 %v3307_v23 }
 0x483   : > { %v2126_v31 = vmul.f32 %v3912_v1, %v1960_v41  ;;  %3923 = vpow2.f32 %v3306_v45 }
 0x484   : > { %v3914_v50 = vpop.eup %3913  ;;  %2546 = vst.msk [vmem:[#allocation6 + $0x18] sm:$0xff] %vm1834_vm8, %v2127_v62 }
 0x485   : > { %v3916_v9 = vpop.eup %3915  ;;  %2545 = vst.msk [vmem:[#allocation6 + $0x10] sm:$0xff] %vm1834_vm8, %v2126_v31  ;;  %v2083_v2 = vadd.f32 1.0, %v3914_v50  ;;  %v3612_v38 = vpop.f32.mrb[24].mxu0  ;;  %3630 = vmatprep.mubr.msk.f32.mxu1 %vm1834_vm8, %v2126_v31 }
 0x486   : > { %v2082_v35 = vadd.f32 1.0, %v3916_v9  ;;  %v4772_v49 = vadd.f32 %v3612_v38, %v4734_v54  ;;  %v1999_v12 = vpop.f32.mrb[25].mxu0  ;;  %3631 = vmatmul.mubr.msk.f32.gmra.mrb[20].mxu1 %vm1834_vm8, %v2127_v62 }
 0x487   : > { %3925 = vrcp.f32 %v2083_v2  ;;  %v4776_v3 = vadd.f32 %v4734_v54, %v1999_v12 }
 0x488   : > { %3927 = vrcp.f32 %v2082_v35  ;;  %v3309_v41 = vmul.f32 -1.442695, %v4772_v49 }
 0x489   : > { %v3918_v15 = vpop.eup %3917  ;;  %v3308_v39 = vmul.f32 -1.442695, %v4776_v3 }
 0x48a   : > { %v3920_v47 = vpop.eup %3919  ;;  %v2129_v57 = vmul.f32 %v3918_v15, %v4741_v26  ;;  %3929 = vpow2.f32 %v3309_v41 }
 0x48b   : > { %v2128_v43 = vmul.f32 %v3920_v47, %v4744_v25  ;;  %3931 = vpow2.f32 %v3308_v39 }
 0x48c   : > { %v3922_v21 = vpop.eup %3921  ;;  %2548 = vst.msk [vmem:[#allocation6 + $0x28] sm:$0xff] %vm1834_vm8, %v2129_v57 }
 0x48d   : > { %v3924_v11 = vpop.eup %3923  ;;  %2547 = vst.msk [vmem:[#allocation6 + $0x20] sm:$0xff] %vm1834_vm8, %v2128_v43  ;;  %v2085_v63 = vadd.f32 1.0, %v3922_v21  ;;  %v3615_v61 = vpop.f32.mrb[26].mxu0  ;;  %3633 = vmatprep.mubr.msk.f32.mxu1 %vm1834_vm8, %v2128_v43 }
 0x48e   : > { %v2084_v7 = vadd.f32 1.0, %v3924_v11  ;;  %v2015_v6 = vadd.f32 %v3615_v61, %v4734_v54  ;;  %v2009_v18 = vpop.f32.mrb[27].mxu0  ;;  %3634 = vmatmul.mubr.msk.f32.gmra.mrb[22].mxu1 %vm1834_vm8, %v2129_v57 }
 0x48f   : > { %3933 = vrcp.f32 %v2085_v63  ;;  %v2010_v26 = vadd.f32 %v4734_v54, %v2009_v18 }
 0x490   : > { %3935 = vrcp.f32 %v2084_v7  ;;  %v3311_v25 = vmul.f32 -1.442695, %v2015_v6 }
 0x491   : > { %v3926_v23 = vpop.eup %3925  ;;  %v3310_v53 = vmul.f32 -1.442695, %v2010_v26 }
 0x492   : > { %v3928_v45 = vpop.eup %3927  ;;  %v2131_v1 = vmul.f32 %v3926_v23, %v4749_v10  ;;  %3937 = vpow2.f32 %v3311_v25 }
 0x493   : > { %v2130_v62 = vmul.f32 %v3928_v45, %v4752_v30  ;;  %3939 = vpow2.f32 %v3310_v53 }
 0x494   : > { %v3930_v31 = vpop.eup %3929  ;;  %2550 = vst.msk [vmem:[#allocation6 + $0x38] sm:$0xff] %vm1834_vm8, %v2131_v1  ;;  %v3618_v50 = vpop.f32.mrb[28].mxu0 }
 0x495   : > { %v3932_v9 = vpop.eup %3931  ;;  %2549 = vst.msk [vmem:[#allocation6 + $0x30] sm:$0xff] %vm1834_vm8, %v2130_v62  ;;  %v2087_v2 = vadd.f32 1.0, %v3930_v31  ;;  %v2025_v38 = vadd.f32 %v3618_v50, %v4734_v54  ;;  %v2019_v35 = vpop.f32.mrb[29].mxu0  ;;  %3636 = vmatprep.mubr.msk.f32.mxu1 %vm1834_vm8, %v2130_v62 }
 0x496   : > { %v2086_v12 = vadd.f32 1.0, %v3932_v9  ;;  %v2020_v10 = vadd.f32 %v4734_v54, %v2019_v35  ;;  %3637 = vmatmul.mubr.msk.f32.gmra.mrb[24].mxu1 %vm1834_vm8, %v2131_v1 }
 0x497   : > { %3941 = vrcp.f32 %v2087_v2  ;;  %v3313_v30 = vmul.f32 -1.442695, %v2025_v38 }
 0x498   : > { %3943 = vrcp.f32 %v2086_v12  ;;  %v3312_v41 = vmul.f32 -1.442695, %v2020_v10 }
 0x499   : > { %v3934_v15 = vpop.eup %3933  ;;  %3945 = vpow2.f32 %v3313_v30 }
 0x49a   : > { %v3936_v39 = vpop.eup %3935  ;;  %v2133_v47 = vmul.f32 %v3934_v15, %v4759_v34  ;;  %3947 = vpow2.f32 %v3312_v41 }
 0x49b   : > { %v2132_v57 = vmul.f32 %v3936_v39, %v4763_v13 }
 0x49c   : > { %v3938_v43 = vpop.eup %3937  ;;  %2552 = vst.msk [vmem:[#allocation6 + $0x48] sm:$0xff] %vm1834_vm8, %v2133_v47 }
 0x49d   : > { %v3940_v21 = vpop.eup %3939  ;;  %2551 = vst.msk [vmem:[#allocation6 + $0x40] sm:$0xff] %vm1834_vm8, %v2132_v57  ;;  %v2089_v54 = vadd.f32 1.0, %v3938_v43  ;;  %3639 = vmatprep.mubr.msk.f32.mxu1 %vm1834_vm8, %v2132_v57 }
 0x49e   : > { %v2088_v11 = vadd.f32 1.0, %v3940_v21  ;;  %3640 = vmatmul.mubr.msk.f32.gmra.mrb[26].mxu1 %vm1834_vm8, %v2133_v47 }
 0x49f   : > { %3949 = vrcp.f32 %v2089_v54 }
 0x4a0   : > { %3951 = vrcp.f32 %v2088_v11 }
 0x4a1   : > { %v3942_v63 = vpop.eup %3941 }
 0x4a2   : > { %v3944_v61 = vpop.eup %3943  ;;  %v2135_v34 = vmul.f32 %v3942_v63, %v4772_v49 }
 0x4a3   : > { %v3946_v7 = vpop.eup %3945  ;;  %v2134_v13 = vmul.f32 %v3944_v61, %v4776_v3 }
 0x4a4   : > { %v3948_v18 = vpop.eup %3947  ;;  %2554 = vst.msk [vmem:[#allocation6 + $0x58] sm:$0xff] %vm1834_vm8, %v2135_v34  ;;  %v2091_v25 = vadd.f32 1.0, %v3946_v7 }
 0x4a5   : > { %2553 = vst.msk [vmem:[#allocation6 + $0x50] sm:$0xff] %vm1834_vm8, %v2134_v13  ;;  %v2090_v23 = vadd.f32 1.0, %v3948_v18  ;;  %3642 = vmatprep.mubr.msk.f32.mxu1 %vm1834_vm8, %v2134_v13 }
 0x4a6   : > { %3953 = vrcp.f32 %v2091_v25  ;;  %3643 = vmatmul.mubr.msk.f32.gmra.mrb[28].mxu1 %vm1834_vm8, %v2135_v34 }
 0x4a7   : > { %3955 = vrcp.f32 %v2090_v23 }
 0x4a9   : > { %v3950_v53 = vpop.eup %3949 }
 0x4aa   : > { %v3952_v45 = vpop.eup %3951  ;;  %v2137_v1 = vmul.f32 %v3950_v53, %v2015_v6  ;;  %v4819_v6 = vld [vmem:[%s5125_s10] ss:$0 sm:$0xff] }
 0x4ab   : > { %v2136_v49 = vmul.f32 %v3952_v45, %v2010_v26 }
 0x4ac   : > { %2556 = vst.msk [vmem:[#allocation6 + $0x68] sm:$0xff] %vm1834_vm8, %v2137_v1 }
 0x4ad   : > { %2555 = vst.msk [vmem:[#allocation6 + $0x60] sm:$0xff] %vm1834_vm8, %v2136_v49  ;;  %3645 = vmatprep.mubr.msk.f32.mxu1 %vm1834_vm8, %v2136_v49 }
 0x4ae   : > { %3646 = vmatmul.mubr.msk.f32.gmra.mrb[30].mxu1 %vm1834_vm8, %v2137_v1 }
 0x4b0   : > { %v3954_v3 = vpop.eup %3953 }
 0x4b1   : > { %v3956_v62 = vpop.eup %3955  ;;  %v2139_v31 = vmul.f32 %v3954_v3, %v2025_v38 }
 0x4b2   : > { %v2138_v50 = vmul.f32 %v3956_v62, %v2020_v10 }
 0x4b3   : > { %2558 = vst.msk [vmem:[#allocation6 + $0x78] sm:$0xff] %vm1834_vm8, %v2139_v31 }
 0x4b4   : > { %2557 = vst.msk [vmem:[#allocation6 + $0x70] sm:$0xff] %vm1834_vm8, %v2138_v50  ;;  %3648 = vmatprep.mubr.msk.f32.mxu1 %vm1834_vm8, %v2138_v50 }
 0x4b5   : > { %3649 = vmatmul.mubr.msk.f32.gmra.mrb[32].mxu1 %vm1834_vm8, %v2139_v31 }
 0x552   : > { %v3629_v26 = vpop.f32.mrb[18].mxu1 }
 0x553   : > { %v2271_v9 = vadd.f32 %v3629_v26, %v4819_v6  ;;  %v2265_v2 = vpop.f32.mrb[19].mxu1  ;;  %v4844_v26 = vld [vmem:[%s5126_s11] ss:$0 sm:$0xff] }
 0x554   : > { %v2266_v38 = vadd.f32 %v4819_v6, %v2265_v2 }
 0x555   : > { %v3332_v35 = vmul.f32 -1.442695, %v2271_v9 }
 0x556   : > { %v3331_v12 = vmul.f32 -1.442695, %v2266_v38 }
 0x557   : > { %3957 = vpow2.f32 %v3332_v35 }
 0x558   : > { %3959 = vpow2.f32 %v3331_v12 }
 0x559   : > { %v3632_v10 = vpop.f32.mrb[20].mxu1 }
 0x55a   : > { %v2281_v30 = vadd.f32 %v3632_v10, %v4819_v6  ;;  %v2275_v41 = vpop.f32.mrb[21].mxu1 }
 0x55b   : > { %v2276_v15 = vadd.f32 %v4819_v6, %v2275_v41 }
 0x55c   : > { %v3334_v39 = vmul.f32 -1.442695, %v2281_v30 }
 0x55d   : > { %v3333_v47 = vmul.f32 -1.442695, %v2276_v15 }
 0x55e   : > { %3961 = vpow2.f32 %v3334_v39 }
 0x55f   : > { %3963 = vpow2.f32 %v3333_v47 }
 0x561   : > { %v3958_v57 = vpop.eup %3957  ;;  %v3635_v43 = vpop.f32.mrb[22].mxu1 }
 0x562   : > { %v3960_v21 = vpop.eup %3959  ;;  %v2393_v54 = vadd.f32 1.0, %v3958_v57  ;;  %v4826_v11 = vadd.f32 %v3635_v43, %v4819_v6  ;;  %v2285_v63 = vpop.f32.mrb[23].mxu1 }
 0x563   : > { %v2392_v61 = vadd.f32 1.0, %v3960_v21  ;;  %v4829_v34 = vadd.f32 %v4819_v6, %v2285_v63 }
 0x564   : > { %3965 = vrcp.f32 %v2393_v54  ;;  %v3336_v7 = vmul.f32 -1.442695, %v4826_v11 }
 0x565   : > { %3967 = vrcp.f32 %v2392_v61  ;;  %v3335_v13 = vmul.f32 -1.442695, %v4829_v34 }
 0x566   : > { %3969 = vpow2.f32 %v3336_v7 }
 0x567   : > { %3971 = vpow2.f32 %v3335_v13 }
 0x568   : > { %v3962_v18 = vpop.eup %3961 }
 0x569   : > { %v3964_v25 = vpop.eup %3963  ;;  %v2395_v23 = vadd.f32 1.0, %v3962_v18  ;;  %v3638_v53 = vpop.f32.mrb[24].mxu1 }
 0x56a   : > { %v2394_v45 = vadd.f32 1.0, %v3964_v25  ;;  %v4834_v1 = vadd.f32 %v3638_v53, %v4819_v6  ;;  %v2295_v49 = vpop.f32.mrb[25].mxu1 }
 0x56b   : > { %3973 = vrcp.f32 %v2395_v23  ;;  %v4837_v3 = vadd.f32 %v4819_v6, %v2295_v49 }
 0x56c   : > { %3975 = vrcp.f32 %v2394_v45  ;;  %v3338_v62 = vmul.f32 -1.442695, %v4834_v1 }
 0x56d   : > { %v3337_v31 = vmul.f32 -1.442695, %v4837_v3 }
 0x56e   : > { %v3966_v50 = vpop.eup %3965  ;;  %3977 = vpow2.f32 %v3338_v62 }
 0x56f   : > { %v3968_v2 = vpop.eup %3967  ;;  %v2441_v35 = vmul.f32 %v3966_v50, %v2271_v9  ;;  %3979 = vpow2.f32 %v3337_v31 }
 0x570   : > { %v3970_v12 = vpop.eup %3969  ;;  %v2440_v10 = vmul.f32 %v3968_v2, %v2266_v38 }
 0x571   : > { %v3972_v41 = vpop.eup %3971  ;;  %v2397_v39 = vadd.f32 1.0, %v3970_v12  ;;  %v3641_v47 = vpop.f32.mrb[26].mxu1  ;;  %v2464_v57 = vmul.f32 %v4844_v26, %v2441_v35 }
 0x572   : > { %v2396_v43 = vadd.f32 1.0, %v3972_v41  ;;  %v4848_v21 = vadd.f32 %v3641_v47, %v4819_v6  ;;  %v2305_v54 = vpop.f32.mrb[27].mxu1  ;;  %v2463_v63 = vmul.f32 %v4844_v26, %v2440_v10 }
 0x573   : > { %3981 = vrcp.f32 %v2397_v39  ;;  %v4852_v61 = vadd.f32 %v4819_v6, %v2305_v54  ;;  %v2482_v9 = vsel %vm1834_vm8, %v2464_v57, 0.0 }
 0x574   : > { %3983 = vrcp.f32 %v2396_v43  ;;  %v3340_v38 = vmul.f32 -1.442695, %v4848_v21  ;;  %2483 = vadd.xlane.f32.xlu1 %v2482_v9  ;;  %v2479_v7 = vsel %vm1834_vm8, %v2463_v63, 0.0 }
 0x575   : > { %v3974_v13 = vpop.eup %3973  ;;  %v3339_v18 = vmul.f32 -1.442695, %v4852_v61  ;;  %2480 = vadd.xlane.f32.xlu0 %v2479_v7 }
 0x576   : > { %v3976_v25 = vpop.eup %3975  ;;  %v2443_v23 = vmul.f32 %v3974_v13, %v2281_v30  ;;  %3985 = vpow2.f32 %v3340_v38 }
 0x577   : > { %v2442_v53 = vmul.f32 %v3976_v25, %v2276_v15  ;;  %3987 = vpow2.f32 %v3339_v18 }
 0x578   : > { %v3978_v45 = vpop.eup %3977  ;;  %v2466_v49 = vmul.f32 %v4844_v26, %v2443_v23 }
 0x579   : > { %v3980_v62 = vpop.eup %3979  ;;  %v2399_v31 = vadd.f32 1.0, %v3978_v45  ;;  %v3644_v50 = vpop.f32.mrb[28].mxu1  ;;  %v2465_v2 = vmul.f32 %v4844_v26, %v2442_v53 }
 0x57a   : > { %v2398_v35 = vadd.f32 1.0, %v3980_v62  ;;  %v4861_v12 = vadd.f32 %v3644_v50, %v4819_v6  ;;  %v2315_v10 = vpop.f32.mrb[29].mxu1  ;;  %v2488_v41 = vsel %vm1834_vm8, %v2466_v49, 0.0 }
 0x57b   : > { %3989 = vrcp.f32 %v2399_v31  ;;  %v4865_v30 = vadd.f32 %v4819_v6, %v2315_v10  ;;  %2489 = vadd.xlane.f32.xlu1 %v2488_v41  ;;  %v2485_v15 = vsel %vm1834_vm8, %v2465_v2, 0.0 }
 0x57c   : > { %3991 = vrcp.f32 %v2398_v35  ;;  %v3342_v39 = vmul.f32 -1.442695, %v4861_v12  ;;  %2486 = vadd.xlane.f32.xlu0 %v2485_v15 }
 0x57d   : > { %v3982_v47 = vpop.eup %3981  ;;  %v3341_v57 = vmul.f32 -1.442695, %v4865_v30 }
 0x57e   : > { %v3984_v43 = vpop.eup %3983  ;;  %v2445_v54 = vmul.f32 %v3982_v47, %v4826_v11  ;;  %3993 = vpow2.f32 %v3342_v39 }
 0x57f   : > { %v2444_v63 = vmul.f32 %v3984_v43, %v4829_v34  ;;  %3995 = vpow2.f32 %v3341_v57 }
 0x580   : > { %v3986_v9 = vpop.eup %3985  ;;  %v2468_v38 = vmul.f32 %v4844_v26, %v2445_v54 }
 0x581   : > { %v3988_v7 = vpop.eup %3987  ;;  %v2401_v13 = vadd.f32 1.0, %v3986_v9  ;;  %v3647_v18 = vpop.f32.mrb[30].mxu1  ;;  %v2467_v25 = vmul.f32 %v4844_v26, %v2444_v63 }
 0x582   : > { %v2400_v23 = vadd.f32 1.0, %v3988_v7  ;;  %v4875_v53 = vadd.f32 %v3647_v18, %v4819_v6  ;;  %v2325_v45 = vpop.f32.mrb[31].mxu1  ;;  %v2494_v49 = vsel %vm1834_vm8, %v2468_v38, 0.0 }
 0x583   : > { %3997 = vrcp.f32 %v2401_v13  ;;  %v4879_v11 = vadd.f32 %v4819_v6, %v2325_v45  ;;  %2495 = vadd.xlane.f32.xlu1 %v2494_v49  ;;  %v2491_v34 = vsel %vm1834_vm8, %v2467_v25, 0.0 }
 0x584   : > { %3999 = vrcp.f32 %v2400_v23  ;;  %v3344_v62 = vmul.f32 -1.442695, %v4875_v53  ;;  %2492 = vadd.xlane.f32.xlu0 %v2491_v34 }
 0x585   : > { %v3990_v31 = vpop.eup %3989  ;;  %v3343_v50 = vmul.f32 -1.442695, %v4879_v11 }
 0x586   : > { %v3992_v2 = vpop.eup %3991  ;;  %v2447_v35 = vmul.f32 %v3990_v31, %v4834_v1  ;;  %4001 = vpow2.f32 %v3344_v62 }
 0x587   : > { %v2446_v10 = vmul.f32 %v3992_v2, %v4837_v3  ;;  %4003 = vpow2.f32 %v3343_v50 }
 0x588   : > { %v3994_v41 = vpop.eup %3993  ;;  %v3650_v15 = vpop.f32.mrb[32].mxu1  ;;  %v2470_v39 = vmul.f32 %v4844_v26, %v2447_v35 }
 0x589   : > { %v3996_v47 = vpop.eup %3995  ;;  %v2403_v57 = vadd.f32 1.0, %v3994_v41  ;;  %v2341_v43 = vadd.f32 %v3650_v15, %v4819_v6  ;;  %v2335_v54 = vpop.f32.mrb[33].mxu1  ;;  %v2469_v63 = vmul.f32 %v4844_v26, %v2446_v10 }
 0x58a   : > { %v2402_v9 = vadd.f32 1.0, %v3996_v47  ;;  %v2336_v38 = vadd.f32 %v4819_v6, %v2335_v54  ;;  %v2500_v1 = vsel %vm1834_vm8, %v2470_v39, 0.0 }
 0x58b   : > { %4005 = vrcp.f32 %v2403_v57  ;;  %v3346_v7 = vmul.f32 -1.442695, %v2341_v43  ;;  %2501 = vadd.xlane.f32.xlu1 %v2500_v1  ;;  %v2497_v3 = vsel %vm1834_vm8, %v2469_v63, 0.0 }
 0x58c   : > { %4007 = vrcp.f32 %v2402_v9  ;;  %v3345_v13 = vmul.f32 -1.442695, %v2336_v38  ;;  %2498 = vadd.xlane.f32.xlu0 %v2497_v3 }
 0x58d   : > { %v3998_v18 = vpop.eup %3997  ;;  %4009 = vpow2.f32 %v3346_v7 }
 0x58e   : > { %v4000_v25 = vpop.eup %3999  ;;  %v2449_v23 = vmul.f32 %v3998_v18, %v4848_v21  ;;  %4011 = vpow2.f32 %v3345_v13 }
 0x58f   : > { %v2448_v45 = vmul.f32 %v4000_v25, %v4852_v61 }
 0x590   : > { %v4002_v49 = vpop.eup %4001  ;;  %v2472_v6 = vmul.f32 %v4844_v26, %v2449_v23 }
 0x591   : > { %v4004_v34 = vpop.eup %4003  ;;  %v2405_v62 = vadd.f32 1.0, %v4002_v49  ;;  %v2471_v31 = vmul.f32 %v4844_v26, %v2448_v45 }
 0x592   : > { %v2404_v50 = vadd.f32 1.0, %v4004_v34  ;;  %v2506_v2 = vsel %vm1834_vm8, %v2472_v6, 0.0 }
 0x593   : > { %4013 = vrcp.f32 %v2405_v62  ;;  %2507 = vadd.xlane.f32.xlu1 %v2506_v2  ;;  %v2503_v35 = vsel %vm1834_vm8, %v2471_v31, 0.0 }
 0x594   : > { %4015 = vrcp.f32 %v2404_v50  ;;  %2504 = vadd.xlane.f32.xlu0 %v2503_v35 }
 0x595   : > { %v4006_v21 = vpop.eup %4005 }
 0x596   : > { %v4008_v10 = vpop.eup %4007  ;;  %v2451_v61 = vmul.f32 %v4006_v21, %v4861_v12 }
 0x597   : > { %v4010_v41 = vpop.eup %4009  ;;  %v2450_v15 = vmul.f32 %v4008_v10, %v4865_v30 }
 0x598   : > { %v4012_v39 = vpop.eup %4011  ;;  %v2407_v47 = vadd.f32 1.0, %v4010_v41  ;;  %v2474_v57 = vmul.f32 %v4844_v26, %v2451_v61 }
 0x599   : > { %v2406_v54 = vadd.f32 1.0, %v4012_v39  ;;  %v2473_v63 = vmul.f32 %v4844_v26, %v2450_v15 }
 0x59a   : > { %4017 = vrcp.f32 %v2407_v47  ;;  %v2512_v9 = vsel %vm1834_vm8, %v2474_v57, 0.0 }
 0x59b   : > { %4019 = vrcp.f32 %v2406_v54  ;;  %2513 = vadd.xlane.f32.xlu1 %v2512_v9  ;;  %v2509_v1 = vsel %vm1834_vm8, %v2473_v63, 0.0 }
 0x59c   : > { %2510 = vadd.xlane.f32.xlu0 %v2509_v1 }
 0x59d   : > { %v4014_v7 = vpop.eup %4013 }
 0x59e   : > { %v4016_v12 = vpop.eup %4015  ;;  %v2453_v3 = vmul.f32 %v4014_v7, %v4875_v53 }
 0x59f   : > { %v2452_v30 = vmul.f32 %v4016_v12, %v4879_v11 }
 0x5a0   : > { %v2476_v13 = vmul.f32 %v4844_v26, %v2453_v3  ;;  %v4057_v3 = vmov 0.0|0.0  }
 0x5a1   : > { %v2475_v18 = vmul.f32 %v4844_v26, %v2452_v30  ;;  %3759 = vmatprep.subr.bf16.mxu0 %v4057_v3 }
 0x5a2   : > { %v2518_v25 = vsel %vm1834_vm8, %v2476_v13, 0.0 }
 0x5a3   : > { %2519 = vadd.xlane.f32.xlu1 %v2518_v25  ;;  %v2515_v23 = vsel %vm1834_vm8, %v2475_v18, 0.0 }
 0x5a4   : > { %v4018_v45 = vpop.eup %4017  ;;  %2516 = vadd.xlane.f32.xlu0 %v2515_v23 }
 0x5a5   : > { %v4020_v49 = vpop.eup %4019  ;;  %v2455_v6 = vmul.f32 %v4018_v45, %v2341_v43 }
 0x5a6   : > { %v2454_v34 = vmul.f32 %v4020_v49, %v2336_v38 }
 0x5a7   : > { %v2478_v62 = vmul.f32 %v4844_v26, %v2455_v6 }
 0x5a8   : > { %v2477_v53 = vmul.f32 %v4844_v26, %v2454_v34 }
 0x5a9   : > { %v2524_v11 = vsel %vm1834_vm8, %v2478_v62, 0.0 }
 0x5aa   : > { %2525 = vadd.xlane.f32.xlu1 %v2524_v11  ;;  %v2521_v31 = vsel %vm1834_vm8, %v2477_v53, 0.0 }
 0x5ab   : > { %2522 = vadd.xlane.f32.xlu0 %v2521_v31 }
 0x601   : > { %v2484_v50 = vpop.xlane.xlu1 %2483 }
 0x602   : > { %v2528_v2 = vmul.f32 %v2484_v50, %v4457_v17  ;;  %v2481_v35 = vpop.xlane.xlu0 %2480 }
 0x603   : > { %v2527_v21 = vmul.f32 %v2481_v35, %v4461_v19 }
 0x604   : > { %2577 = vrot.lane.b32.xlu1 %v2528_v2, %s4056_s20 }
 0x605   : > { %2575 = vrot.lane.b32.xlu0 %v2527_v21, %s4056_s20 }
 0x608   : > { %v2490_v43 = vpop.xlane.xlu1 %2489 }
 0x609   : > { %v2530_v38 = vmul.f32 %v2490_v43, %v4471_v29  ;;  %v2487_v26 = vpop.xlane.xlu0 %2486 }
 0x60a   : > { %v2529_v10 = vmul.f32 %v2487_v26, %v4475_v33 }
 0x60b   : > { %2581 = vrot.lane.b32.xlu0 %v2530_v38, %s4056_s20 }
 0x60c   : > { %2579 = vrot.lane.b32.xlu1 %v2529_v10, %s4056_s20 }
 0x610   : > { %v2496_v61 = vpop.xlane.xlu1 %2495 }
 0x611   : > { %v2532_v17 = vmul.f32 %v2496_v61, %v4485_v42  ;;  %v2493_v41 = vpop.xlane.xlu0 %2492 }
 0x612   : > { %v2531_v19 = vmul.f32 %v2493_v41, %v4489_v46 }
 0x613   : > { %2585 = vrot.lane.b32.xlu0 %v2532_v17, %s4056_s20 }
 0x614   : > { %2583 = vrot.lane.b32.xlu1 %v2531_v19, %s4056_s20 }
 0x618   : > { %v2502_v15 = vpop.xlane.xlu1 %2501 }
 0x619   : > { %v2534_v29 = vmul.f32 %v2502_v15, %v4499_v55  ;;  %v2499_v39 = vpop.xlane.xlu0 %2498 }
 0x61a   : > { %v2533_v33 = vmul.f32 %v2499_v39, %v4503_v59  ;;  %v5150_v39 = vmov 0.0  }
 0x61b   : > { %2589 = vrot.lane.b32.xlu0 %v2534_v29, %s4056_s20  ;;  %3683 = vmatprep.mubr.msk.f32.mxu0 %vm4059_vm9, %v5150_v39 }
 0x61c   : > { %2587 = vrot.lane.b32.xlu1 %v2533_v33, %s4056_s20 }
 0x620   : > { %v2508_v47 = vpop.xlane.xlu1 %2507 }
 0x621   : > { %v2536_v42 = vmul.f32 %v2508_v47, %v4513_v5  ;;  %v2505_v57 = vpop.xlane.xlu0 %2504 }
 0x622   : > { %v2535_v46 = vmul.f32 %v2505_v57, %v4517_v14 }
 0x623   : > { %2593 = vrot.lane.b32.xlu0 %v2536_v42, %s4056_s20 }
 0x624   : > { %2591 = vrot.lane.b32.xlu1 %v2535_v46, %s4056_s20 }
 0x628   : > { %v2514_v54 = vpop.xlane.xlu1 %2513 }
 0x629   : > { %v2538_v55 = vmul.f32 %v2514_v54, %v4527_v27  ;;  %v2511_v63 = vpop.xlane.xlu0 %2510 }
 0x62a   : > { %v2537_v59 = vmul.f32 %v2511_v63, %v4531_v37 }
 0x62b   : > { %2597 = vrot.lane.b32.xlu0 %v2538_v55, %s4056_s20 }
 0x62c   : > { %2595 = vrot.lane.b32.xlu1 %v2537_v59, %s4056_s20 }
 0x630   : > { %v2520_v9 = vpop.xlane.xlu1 %2519 }
 0x631   : > { %v2540_v5 = vmul.f32 %v2520_v9, %v4541_v51  ;;  %v2517_v1 = vpop.xlane.xlu0 %2516 }
 0x632   : > { %v2539_v14 = vmul.f32 %v2517_v1, %v4545_v58 }
 0x633   : > { %2601 = vrot.lane.b32.xlu0 %v2540_v5, %s4056_s20 }
 0x634   : > { %2599 = vrot.lane.b32.xlu1 %v2539_v14, %s4056_s20 }
 0x637   : > { %v2526_v7 = vpop.xlane.xlu1 %2525 }
 0x638   : > { %v2542_v27 = vmul.f32 %v2526_v7, %v4555_v4  ;;  %v2523_v12 = vpop.xlane.xlu0 %2522 }
 0x639   : > { %v2541_v37 = vmul.f32 %v2523_v12, %v4562_v22 }
 0x63a   : > { %2605 = vrot.lane.b32.xlu0 %v2542_v27, %s4056_s20 }
 0x63b   : > { %2603 = vrot.lane.b32.xlu1 %v2541_v37, %s4056_s20  ;;  %v5152_v37 = vld [vmem:[#allocation8_spill] sm:$0xff] }
 0x676   : > { %v2578_v51 = vpop.permute.xlu1 %2577 }
 0x677   : > { %v2624_v58 = vsel %vm1584_vm5, %v2578_v51, 1.0  ;;  %v2576_v30 = vpop.permute.xlu0 %2575 }
 0x678   : > { %v2623_v13 = vsel %vm1584_vm5, %v2576_v30, 1.0  ;;  %2657 = vrot.lane.b32.xlu0 %v2624_v58, %s4058_s25 }
 0x679   : > { %2655 = vrot.lane.b32.xlu1 %v2623_v13, %s4058_s25 }
 0x67d   : > { %v2582_v4 = vpop.permute.xlu0 %2581 }
 0x67e   : > { %v2626_v22 = vsel %vm1584_vm5, %v2582_v4, 1.0  ;;  %v2580_v18 = vpop.permute.xlu1 %2579 }
 0x67f   : > { %v2625_v25 = vsel %vm1584_vm5, %v2580_v18, 1.0  ;;  %2661 = vrot.lane.b32.xlu0 %v2626_v22, %s4058_s25 }
 0x680   : > { %2659 = vrot.lane.b32.xlu1 %v2625_v25, %s4058_s25 }
 0x685   : > { %v2586_v23 = vpop.permute.xlu0 %2585 }
 0x686   : > { %v2628_v45 = vsel %vm1584_vm5, %v2586_v23, 1.0  ;;  %v2584_v49 = vpop.permute.xlu1 %2583 }
 0x687   : > { %v2627_v6 = vsel %vm1584_vm5, %v2584_v49, 1.0  ;;  %2665 = vrot.lane.b32.xlu0 %v2628_v45, %s4058_s25 }
 0x688   : > { %2663 = vrot.lane.b32.xlu1 %v2627_v6, %s4058_s25 }
 0x68d   : > { %v2590_v34 = vpop.permute.xlu0 %2589 }
 0x68e   : > { %v2630_v62 = vsel %vm1584_vm5, %v2590_v34, 1.0  ;;  %v2588_v53 = vpop.permute.xlu1 %2587 }
 0x68f   : > { %v2629_v11 = vsel %vm1584_vm5, %v2588_v53, 1.0  ;;  %2669 = vrot.lane.b32.xlu0 %v2630_v62, %s4058_s25 }
 0x690   : > { %2667 = vrot.lane.b32.xlu1 %v2629_v11, %s4058_s25  ;;  %v2752_v11 = vld [vmem:[#allocation2] sm:$0xff] }
 0x695   : > { %v2594_v31 = vpop.permute.xlu0 %2593 }
 0x696   : > { %v2632_v50 = vsel %vm1584_vm5, %v2594_v31, 1.0  ;;  %v2592_v2 = vpop.permute.xlu1 %2591 }
 0x697   : > { %v2631_v35 = vsel %vm1584_vm5, %v2592_v2, 1.0  ;;  %2673 = vrot.lane.b32.xlu0 %v2632_v50, %s4058_s25  ;;  %v2753_v2 = vld [vmem:[#allocation2 + $0x8] sm:$0xff] }
 0x698   : > { %2671 = vrot.lane.b32.xlu1 %v2631_v35, %s4058_s25 }
 0x69d   : > { %v2598_v21 = vpop.permute.xlu0 %2597 }
 0x69e   : > { %v2634_v43 = vsel %vm1584_vm5, %v2598_v21, 1.0  ;;  %v2596_v38 = vpop.permute.xlu1 %2595 }
 0x69f   : > { %v2633_v26 = vsel %vm1584_vm5, %v2596_v38, 1.0  ;;  %2677 = vrot.lane.b32.xlu0 %v2634_v43, %s4058_s25  ;;  %v2754_v38 = vld [vmem:[#allocation2 + $0x10] sm:$0xff] }
 0x6a0   : > { %2675 = vrot.lane.b32.xlu1 %v2633_v26, %s4058_s25 }
 0x6a5   : > { %v2602_v10 = vpop.permute.xlu0 %2601 }
 0x6a6   : > { %v2636_v61 = vsel %vm1584_vm5, %v2602_v10, 1.0  ;;  %v2600_v17 = vpop.permute.xlu1 %2599 }
 0x6a7   : > { %v2635_v41 = vsel %vm1584_vm5, %v2600_v17, 1.0  ;;  %2681 = vrot.lane.b32.xlu0 %v2636_v61, %s4058_s25  ;;  %v2867_v17 = vld [vmem:[%s5128_s13] sm:$0xff] (!%p3348_p5) }
 0x6a8   : > { %2679 = vrot.lane.b32.xlu1 %v2635_v41, %s4058_s25  ;;  %v2868_v41 = vld [vmem:[%s5128_s13 + $0x8] sm:$0xff] (!%p3348_p5) }
 0x6ac   : > { %v2606_v19 = vpop.permute.xlu0 %2605 }
 0x6ad   : > { %v2638_v15 = vsel %vm1584_vm5, %v2606_v19, 1.0  ;;  %v2604_v29 = vpop.permute.xlu1 %2603  ;;  %v2869_v19 = vld [vmem:[%s5128_s13 + $0x10] sm:$0xff] (!%p3348_p5) }
 0x6ae   : > { %v2637_v33 = vsel %vm1584_vm5, %v2604_v29, 1.0  ;;  %2685 = vrot.lane.b32.xlu0 %v2638_v15, %s4058_s25  ;;  %v4060_v15 = vmov (!%p3348_p5), 0.0|0.0   ;;  %v3784_v29 = vpack.c.bf16 (!%p3348_p5), %v2868_v41, %v2867_v17 }
 0x6af   : > { %2683 = vrot.lane.b32.xlu1 %v2637_v33, %s4058_s25  ;;  %v4062_v33 = vmov (!%p3348_p5), 0.0   ;;  %3789 = vmatprep.subr.bf16.mxu1 (!%p3348_p5), %v4060_v15 }
 0x6b0   : > { %3717 = vmatprep.mubr.msk.f32.mxu1 (!%p3348_p5), %vm4061_vm11, %v4062_v33 }
 0x6d8   : > { %2720 = vxpose.xlu1.b32.start [1/16] (narrow) %v4314_v8, 24 }
 0x6dc   : > { %2721 = vxpose.xlu1.b32.cont [2/16] (narrow) %v4332_v16, 24 }
 0x6e0   : > { %2722 = vxpose.xlu1.b32.cont [3/16] (narrow) %v4341_v20, 24 }
 0x6e4   : > { %2723 = vxpose.xlu1.b32.cont [4/16] (narrow) %v4350_v24, 24 }
 0x6e8   : > { %2724 = vxpose.xlu1.b32.cont [5/16] (narrow) %v4359_v28, 24 }
 0x6ea   : > { %v2658_v47 = vpop.permute.xlu0 %2657 }
 0x6eb   : > { %2705 = vst.msk [vmem:[#allocation6 + $0x8] sm:$0xff] %vm2703_vm10, %v2658_v47  ;;  %v2656_v42 = vpop.permute.xlu1 %2655 }
 0x6ec   : > { %2725 = vxpose.xlu1.b32.cont [6/16] (narrow) %v4368_v32, 24  ;;  %2704 = vst.msk [vmem:[#allocation6] sm:$0xff] %vm2703_vm10, %v2656_v42 }
 0x6f0   : > { %2726 = vxpose.xlu1.b32.cont [7/16] (narrow) %v4377_v36, 24 }
 0x6f1   : > { %v2662_v8 = vpop.permute.xlu0 %2661 }
 0x6f2   : > { %2707 = vst.msk [vmem:[#allocation6 + $0x18] sm:$0xff] %vm2703_vm10, %v2662_v8  ;;  %v2660_v16 = vpop.permute.xlu1 %2659  ;;  %v2756_v20 = vld [vmem:[#allocation6 + $0x8] sm:$0xff]  ;;  %v4063_v8 = vmov (!%p3348_p5), 35  }
 0x6f3   : > { %2706 = vst.msk [vmem:[#allocation6 + $0x10] sm:$0xff] %vm2703_vm10, %v2660_v16  ;;  %v2755_v24 = vld [vmem:[#allocation6] sm:$0xff]  ;;  %4021 = vset.pattern.permute.xlu0 (!%p3348_p5), %v4063_v8 }
 0x6f4   : > { %2727 = vxpose.xlu1.b32.cont [8/16] (narrow) %v4386_v40, 24  ;;  %v3760_v28 = vpack.c.bf16 %v2756_v20, %v2755_v24 }
 0x6f6   : > { %3761 = vmatpush3.bf16.msra.mxu0 %v3760_v28 }
 0x6f7   : > { %3762 = vmatprep.subr.bf16.mxu0 %v4057_v3 }
 0x6f8   : > { %2728 = vxpose.xlu1.b32.cont [9/16] (narrow) %v4395_v44, 24 }
 0x6f9   : > { %v2666_v32 = vpop.permute.xlu0 %2665  ;;  %v2758_v57 = vld [vmem:[#allocation6 + $0x18] sm:$0xff] }
 0x6fa   : > { %2709 = vst.msk [vmem:[#allocation6 + $0x28] sm:$0xff] %vm2703_vm10, %v2666_v32  ;;  %v2664_v36 = vpop.permute.xlu1 %2663  ;;  %v2757_v46 = vld [vmem:[#allocation6 + $0x10] sm:$0xff] }
 0x6fb   : > { %2708 = vst.msk [vmem:[#allocation6 + $0x20] sm:$0xff] %vm2703_vm10, %v2664_v36  ;;  %v3763_v54 = vpack.c.bf16 %v2758_v57, %v2757_v46  ;;  %v2994_v57 = vld [vmem:[%s5130_s15] sm:$0xff] (!%p3348_p5)  ;;  %v2995_v36 = vld [vmem:[%s5130_s15 + $0x8] sm:$0xff] (!%p3348_p5) }
 0x6fc   : > { %2729 = vxpose.xlu1.b32.cont [10/16] (narrow) %v4404_v48, 24  ;;  %v3790_v46 = vpack.c.bf16 (!%p3348_p5), %v2995_v36, %v2994_v57 }
 0x6fd   : > { %3764 = vmatpush3.bf16.msra.mxu0 %v3763_v54  ;;  %v2996_v54 = vld [vmem:[%s5130_s15 + $0x10] sm:$0xff] (!%p3348_p5) }
 0x6fe   : > { %3765 = vmatprep.subr.bf16.mxu0 %v4057_v3  ;;  %3791 = vmatpush3.bf16.msra.mxu1 (!%p3348_p5), %v3790_v46 }
 0x6ff   : > { %3792 = vmatprep.subr.bf16.mxu1 (!%p3348_p5), %v4060_v15 }
 0x700   : > { %2730 = vxpose.xlu1.b32.cont [11/16] (narrow) %v4413_v52, 24 }
 0x701   : > { %v2670_v40 = vpop.permute.xlu0 %2669  ;;  %v2760_v55 = vld [vmem:[#allocation6 + $0x28] sm:$0xff] }
 0x702   : > { %2711 = vst.msk [vmem:[#allocation6 + $0x38] sm:$0xff] %vm2703_vm10, %v2670_v40  ;;  %v2668_v44 = vpop.permute.xlu1 %2667  ;;  %v2759_v63 = vld [vmem:[#allocation6 + $0x20] sm:$0xff]  ;;  %v2997_v40 = vld [vmem:[%s5130_s15 + $0x18] sm:$0xff] (!%p3348_p5) }
 0x703   : > { %2710 = vst.msk [vmem:[#allocation6 + $0x30] sm:$0xff] %vm2703_vm10, %v2668_v44  ;;  %v3766_v59 = vpack.c.bf16 %v2760_v55, %v2759_v63  ;;  %v3793_v55 = vpack.c.bf16 (!%p3348_p5), %v2997_v40, %v2996_v54  ;;  %v3096_v54 = vld [vmem:[%s5154_s2 + $0x10] sm:$0xff] (!%p3348_p5) }
 0x704   : > { %2731 = vxpose.xlu1.b32.cont [12/16] (narrow) %v4422_v56, 24  ;;  %v5151_v56 = vld [vmem:[#allocation7_spill] sm:$0xff] }
 0x705   : > { %3767 = vmatpush3.bf16.msra.mxu0 %v3766_v59  ;;  %3794 = vmatpush3.bf16.msra.mxu1 (!%p3348_p5), %v3793_v55 }
 0x706   : > { %3768 = vmatprep.subr.bf16.mxu0 %v4057_v3 }
 0x708   : > { %2732 = vxpose.xlu1.b32.cont [13/16] (narrow) %v4431_v60, 24 }
 0x709   : > { %v2674_v48 = vpop.permute.xlu0 %2673  ;;  %v2762_v9 = vld [vmem:[#allocation6 + $0x38] sm:$0xff] }
 0x70a   : > { %2713 = vst.msk [vmem:[#allocation6 + $0x48] sm:$0xff] %vm2703_vm10, %v2674_v48  ;;  %v2672_v52 = vpop.permute.xlu1 %2671  ;;  %v2761_v5 = vld [vmem:[#allocation6 + $0x30] sm:$0xff] }
 0x70b   : > { %2712 = vst.msk [vmem:[#allocation6 + $0x40] sm:$0xff] %vm2703_vm10, %v2672_v52  ;;  %v3769_v1 = vpack.c.bf16 %v2762_v9, %v2761_v5 }
 0x70c   : > { %2733 = vxpose.xlu1.b32.cont [14/16] (narrow) %v4440_v0, 24 }
 0x70d   : > { %3770 = vmatpush3.bf16.msra.mxu0 %v3769_v1 }
 0x70e   : > { %3771 = vmatprep.subr.bf16.mxu0 %v4057_v3 }
 0x710   : > { %2734 = vxpose.xlu1.b32.cont [15/16] (narrow) %v5151_v56, 24 }
 0x711   : > { %v2678_v14 = vpop.permute.xlu0 %2677  ;;  %v2764_v7 = vld [vmem:[#allocation6 + $0x48] sm:$0xff] }
 0x712   : > { %2715 = vst.msk [vmem:[#allocation6 + $0x58] sm:$0xff] %vm2703_vm10, %v2678_v14  ;;  %v2676_v60 = vpop.permute.xlu1 %2675  ;;  %v2763_v27 = vld [vmem:[#allocation6 + $0x40] sm:$0xff]  ;;  %v2864_v14 = vld [vmem:[#allocation5] sm:$0xff] (!%p3348_p5) }
 0x713   : > { %2714 = vst.msk [vmem:[#allocation6 + $0x50] sm:$0xff] %vm2703_vm10, %v2676_v60  ;;  %v3772_v12 = vpack.c.bf16 %v2764_v7, %v2763_v27  ;;  %v3352_v60 = vld [vmem:[%s5129_s14] ss:$0 sm:$0xff] (!%p3348_p5) }
 0x714   : > { %2735 = vxpose.xlu1.b32.end [16/16] (narrow) %v5152_v37, 24  ;;  %v2865_v37 = vld [vmem:[#allocation5 + $0x8] sm:$0xff] (!%p3348_p5) }
 0x715   : > { %3773 = vmatpush3.bf16.msra.mxu0 %v3772_v12 }
 0x716   : > { %3774 = vmatprep.subr.bf16.mxu0 %v4057_v3 }
 0x719   : > { %v2682_v0 = vpop.permute.xlu0 %2681  ;;  %v2766_v51 = vld [vmem:[#allocation6 + $0x58] sm:$0xff] }
 0x71a   : > { %2717 = vst.msk [vmem:[#allocation6 + $0x68] sm:$0xff] %vm2703_vm10, %v2682_v0  ;;  %v2680_v58 = vpop.permute.xlu1 %2679  ;;  %v2765_v30 = vld [vmem:[#allocation6 + $0x50] sm:$0xff] }
 0x71b   : > { %2716 = vst.msk [vmem:[#allocation6 + $0x60] sm:$0xff] %vm2703_vm10, %v2680_v58  ;;  %v3775_v13 = vpack.c.bf16 %v2766_v51, %v2765_v30 }
 0x71d   : > { %3776 = vmatpush3.bf16.msra.mxu0 %v3775_v13 }
 0x71e   : > { %3777 = vmatprep.subr.bf16.mxu0 %v4057_v3 }
 0x720   : > { %v2686_v4 = vpop.permute.xlu0 %2685 }
 0x721   : > { %2719 = vst.msk [vmem:[#allocation6 + $0x78] sm:$0xff] %vm2703_vm10, %v2686_v4  ;;  %v2684_v22 = vpop.permute.xlu1 %2683  ;;  %v2768_v18 = vld [vmem:[#allocation6 + $0x68] sm:$0xff]  ;;  %v2866_v4 = vld [vmem:[#allocation5 + $0x10] sm:$0xff] (!%p3348_p5) }
 0x722   : > { %2718 = vst.msk [vmem:[#allocation6 + $0x70] sm:$0xff] %vm2703_vm10, %v2684_v22  ;;  %v2767_v25 = vld [vmem:[#allocation6 + $0x60] sm:$0xff] }
 0x723   : > { %v3778_v23 = vpack.c.bf16 %v2768_v18, %v2767_v25 }
 0x725   : > { %3779 = vmatpush3.bf16.msra.mxu0 %v3778_v23 }
 0x726   : > { %3780 = vmatprep.subr.bf16.mxu0 %v4057_v3 }
 0x728   : > { %v2770_v45 = vld [vmem:[#allocation6 + $0x78] sm:$0xff] }
 0x729   : > { %v2769_v49 = vld [vmem:[#allocation6 + $0x70] sm:$0xff] }
 0x72a   : > { %v3781_v6 = vpack.c.bf16 %v2770_v45, %v2769_v49 }
 0x72c   : > { %3782 = vmatpush3.bf16.msra.mxu0 %v3781_v6 }
 0x72d   : > { %3783 = vmatprep.subr.bf16.mxu0 (!%p3348_p5), %v4060_v15 }
 0x732   : > { %4022 = vset.pattern.permute.xlu1 (!%p3348_p5), %v4063_v8 }
 0x758   : > { %v2736_v34 = vpop.trf.xlu1 }
 0x759   : > { %3684 = vmatmul.mubr.f32.vlgmr.msra.gmra.mrb[30].mxu0 %v2736_v34 }
 0x75a   : > { %3686 = vmatprep.mubr.msk.f32.mxu0 %vm4059_vm9, %v5150_v39  ;;  %3785 = vmatpush3.bf16.msra.mxu0 (!%p3348_p5), %v3784_v29 }
 0x75b   : > { %3786 = vmatprep.subr.bf16.mxu0 (!%p3348_p5), %v4060_v15  ;;  %v3106_v15 = vld [vmem:[%s5153_s22 + $0x10] sm:$0xff] (!%p3348_p5) }
 0x75c   : > { %v2737_v62 = vpop.trf.xlu1 }
 0x75d   : > { %3687 = vmatmul.mubr.f32.gmra.mrb[32].mxu0 %v2737_v62 }
 0x75e   : > { %3689 = vmatprep.mubr.msk.f32.mxu0 %vm4059_vm9, %v5150_v39  ;;  %v2870_v39 = vld [vmem:[%s5128_s13 + $0x18] sm:$0xff] (!%p3348_p5) }
 0x75f   : > { %v3787_v20 = vpack.c.bf16 (!%p3348_p5), %v2870_v39, %v2869_v19 }
 0x760   : > { %v2738_v53 = vpop.trf.xlu1 }
 0x761   : > { %3690 = vmatmul.mubr.f32.gmra.mrb[34].mxu0 %v2738_v53 }
 0x762   : > { %3700 = vmatprep.mubr.msk.f32.mxu0 (!%p3348_p5), %vm4061_vm11, %v4062_v33  ;;  %3788 = vmatpush3.bf16.msra.mxu0 (!%p3348_p5), %v3787_v20 }
 0x82c   : > { %v2837_v31 = vpop.f32.mrb[30].mxu0 }
 0x82d   : > { %v2851_v50 = vadd.f32 %v2837_v31, %v2752_v11  ;;  %v3685_v3 = vpop.f32.mrb[31].mxu0 }
 0x82f   : > { %2854 = vst [vmem:[#allocation2] sm:$0xff] %v2851_v50 }
 0x830   : > { %v2842_v35 = vpop.f32.mrb[32].mxu0 }
 0x831   : > { %v2852_v21 = vadd.f32 %v2842_v35, %v2753_v2  ;;  %v3688_v43 = vpop.f32.mrb[33].mxu0  ;;  %2860 = sbr.rel (%p3348_p5) target bundleno = 2572 (0xa0c), region = 96 }
 0x833   : > { %2855 = vst [vmem:[#allocation2 + $0x8] sm:$0xff] %v2852_v21 }
 0x834   : > { %v2847_v26 = vpop.f32.mrb[34].mxu0 }
 0x835   : > { %v2853_v10 = vadd.f32 %v2847_v26, %v2754_v38  ;;  %v3691_v61 = vpop.f32.mrb[35].mxu0  ;;  %v3104_v26 = vld [vmem:[%s5153_s22] sm:$0xff] (!%p3348_p5) }
 0x836   : > { %v2861_v47 = vld [vmem:[#allocation2] sm:$0xff] (!%p3348_p5)  ;;  %v3105_v61 = vld [vmem:[%s5153_s22 + $0x8] sm:$0xff] (!%p3348_p5) }
 0x837   : > { %2856 = vst [vmem:[#allocation2 + $0x10] sm:$0xff] %v2853_v10  ;;  %v3107_v16 = vmax.f32 (!%p3348_p5), %v2861_v47, 1.0  ;;  %3701 = vmatmul.mubr.msk.f32.vlgmr.msra.gmra.mrb[0].mxu0 (!%p3348_p5), %vm1834_vm8, %v2861_v47 }
 0x838   : > { %3703 = vmatprep.mubr.msk.f32.mxu0 %vm4061_vm11, %v4062_v33 }
 0x839   : > { %3112 = vperm.xlu0 %4021, %v3107_v16  }
 0x83a   : > { %v2862_v24 = vld [vmem:[#allocation2 + $0x8] sm:$0xff] }
 0x83b   : > { %v3108_v32 = vmax.f32 %v2862_v24, 1.0  ;;  %3704 = vmatmul.mubr.msk.f32.gmra.mrb[2].mxu0 %vm1834_vm8, %v2862_v24 }
 0x83c   : > { %3706 = vmatprep.mubr.msk.f32.mxu0 %vm4061_vm11, %v4062_v33 }
 0x83d   : > { %3117 = vperm.xlu0 %4021, %v3108_v32  }
 0x83e   : > { %v2863_v42 = vld [vmem:[#allocation2 + $0x10] sm:$0xff] }
 0x83f   : > { %v3109_v28 = vmax.f32 %v2863_v42, 1.0  ;;  %3707 = vmatmul.mubr.msk.f32.gmra.mrb[4].mxu0 %vm1834_vm8, %v2863_v42 }
 0x841   : > { %3122 = vperm.xlu1 %4022, %v3109_v28   ;;  %v3095_v28 = vld [vmem:[%s5154_s2 + $0x8] sm:$0xff] }
 0x8b8   : > { %v3113_v44 = vpop.permute.xlu0 %3112 }
 0x8b9   : > { %4023 = vrcp.f32 %v3113_v44 }
 0x8bc   : > { %v3118_v59 = vpop.permute.xlu0 %3117 }
 0x8c0   : > { %v3123_v63 = vpop.permute.xlu1 %3122 }
 0x8c1   : > { %4025 = vrcp.f32 %v3123_v63 }
 0x8c2   : > { %4027 = vrcp.f32 %v3118_v59 }
 0x8c3   : > { %v4024_v48 = vpop.eup %4023 }
 0x8c4   : > { %v3126_v52 = vmul.f32 %v4024_v48, %v2861_v47 }
 0x8c6   : > { %3134 = vrot.lane.b32.xlu1 %v3126_v52, %s4064_s30 }
 0x8cb   : > { %v4026_v9 = vpop.eup %4025 }
 0x8cc   : > { %v3130_v5 = vmul.f32 %v4026_v9, %v2863_v42  ;;  %v4028_v1 = vpop.eup %4027  ;;  %v3094_v42 = vld [vmem:[%s5154_s2] sm:$0xff] }
 0x8cd   : > { %v3128_v56 = vmul.f32 %v4028_v1, %v2862_v24 }
 0x8ce   : > { %3138 = vrot.lane.b32.xlu1 %v3130_v5, %s4064_s30 }
 0x8cf   : > { %3136 = vrot.lane.b32.xlu0 %v3128_v56, %s4064_s30 }
 0x90a   : > { %v2946_v7 = vpop.f32.mrb[0].mxu0 }
 0x90b   : > { %v2960_v27 = vadd.f32 %v2946_v7, %v2864_v14  ;;  %v3702_v12 = vpop.f32.mrb[1].mxu0 }
 0x90d   : > { %v2970_v0 = vadd.f32 %v3352_v60, %v2960_v27 }
 0x90e   : > { %v2951_v51 = vpop.f32.mrb[2].mxu0 }
 0x90f   : > { %v3353_v58 = vmul.f32 -1.442695, %v2970_v0  ;;  %v2961_v30 = vadd.f32 %v2951_v51, %v2865_v37  ;;  %v3705_v13 = vpop.f32.mrb[3].mxu0 }
 0x911   : > { %4029 = vpow2.f32 %v3353_v58  ;;  %v2971_v22 = vadd.f32 %v3352_v60, %v2961_v30 }
 0x912   : > { %v2956_v18 = vpop.f32.mrb[4].mxu0 }
 0x913   : > { %v3354_v25 = vmul.f32 -1.442695, %v2971_v22  ;;  %v2962_v23 = vadd.f32 %v2956_v18, %v2866_v4  ;;  %v3708_v45 = vpop.f32.mrb[5].mxu0 }
 0x915   : > { %4031 = vpow2.f32 %v3354_v25  ;;  %v2972_v49 = vadd.f32 %v3352_v60, %v2962_v23 }
 0x917   : > { %v3355_v6 = vmul.f32 -1.442695, %v2972_v49 }
 0x919   : > { %4033 = vpow2.f32 %v3355_v6 }
 0x91b   : > { %v4030_v34 = vpop.eup %4029 }
 0x91c   : > { %v2982_v62 = vadd.f32 1.0, %v4030_v34 }
 0x91e   : > { %4035 = vrcp.f32 %v2982_v62 }
 0x91f   : > { %v4032_v53 = vpop.eup %4031 }
 0x920   : > { %v2983_v11 = vadd.f32 1.0, %v4032_v53 }
 0x922   : > { %4037 = vrcp.f32 %v2983_v11 }
 0x923   : > { %v4034_v31 = vpop.eup %4033 }
 0x924   : > { %v2984_v50 = vadd.f32 1.0, %v4034_v31 }
 0x926   : > { %4039 = vrcp.f32 %v2984_v50 }
 0x928   : > { %v4036_v3 = vpop.eup %4035 }
 0x929   : > { %v2991_v2 = vmul.f32 %v4036_v3, %v2970_v0 }
 0x92b   : > { %3718 = vmatmul.mubr.msk.f32.vlgmr.msra.gmra.mrb[0].mxu1 %vm1834_vm8, %v2991_v2 }
 0x92c   : > { %v4038_v35 = vpop.eup %4037  ;;  %3720 = vmatprep.mubr.msk.f32.mxu1 %vm4061_vm11, %v4062_v33 }
 0x92d   : > { %v2992_v21 = vmul.f32 %v4038_v35, %v2971_v22 }
 0x92f   : > { %3721 = vmatmul.mubr.msk.f32.gmra.mrb[2].mxu1 %vm1834_vm8, %v2992_v21 }
 0x930   : > { %v4040_v43 = vpop.eup %4039  ;;  %3723 = vmatprep.mubr.msk.f32.mxu1 %vm4061_vm11, %v4062_v33  ;;  %v3356_v33 = vld [vmem:[%s5131_s16] ss:$0 sm:$0xff] }
 0x931   : > { %v2993_v38 = vmul.f32 %v4040_v43, %v2972_v49 }
 0x933   : > { %3724 = vmatmul.mubr.msk.f32.gmra.mrb[4].mxu1 %vm1834_vm8, %v2993_v38 }
 0x938   : > { %v3135_v10 = vpop.permute.xlu1 %3134 }
 0x939   : > { %v3143_v41 = vadd.f32 %v3135_v10, %v3104_v26 }
 0x93b   : > { %3146 = vst.msk [vmem:[%s5133_s18] sm:$0xff] %vm1584_vm5, %v3143_v41 }
 0x940   : > { %v3139_v29 = vpop.permute.xlu1 %3138 }
 0x941   : > { %v3137_v17 = vpop.permute.xlu0 %3136  ;;  %v3145_v39 = vadd.f32 %v3139_v29, %v3106_v15 }
 0x942   : > { %v3144_v19 = vadd.f32 %v3137_v17, %v3105_v61 }
 0x943   : > { %3148 = vst.msk [vmem:[%s5133_s18 + $0x10] sm:$0xff] %vm1584_vm5, %v3145_v39 }
 0x944   : > { %3147 = vst.msk [vmem:[%s5133_s18 + $0x8] sm:$0xff] %vm1584_vm5, %v3144_v19 }
 0x9fe   : > { %v3080_v47 = vpop.f32.mrb[0].mxu1 }
 0x9ff   : > { %v3081_v8 = vadd.f32 %v3356_v33, %v3080_v47  ;;  %v3719_v16 = vpop.f32.mrb[1].mxu1 }
 0xa01   : > { %v3097_v20 = vadd.f32 %v3094_v42, %v3081_v8 }
 0xa02   : > { %v3085_v24 = vpop.f32.mrb[2].mxu1 }
 0xa03   : > { %3101 = vst.msk [vmem:[%s5132_s17] sm:$0xff] %vm3100_vm12, %v3097_v20  ;;  %v3086_v32 = vadd.f32 %v3356_v33, %v3085_v24  ;;  %v3722_v57 = vpop.f32.mrb[3].mxu1 }
 0xa05   : > { %v3098_v36 = vadd.f32 %v3095_v28, %v3086_v32 }
 0xa06   : > { %v3090_v46 = vpop.f32.mrb[4].mxu1 }
 0xa07   : > { %3102 = vst.msk [vmem:[%s5132_s17 + $0x8] sm:$0xff] %vm3100_vm12, %v3098_v36  ;;  %v3091_v40 = vadd.f32 %v3356_v33, %v3090_v46  ;;  %v3725_v55 = vpop.f32.mrb[5].mxu1 }
 0xa09   : > { %v3099_v44 = vadd.f32 %v3096_v54, %v3091_v40 }
 0xa0b   : > { %3103 = vst.msk [vmem:[%s5132_s17 + $0x10] sm:$0xff] %vm3100_vm12, %v3099_v44 }
 0xa0c PF: > { %s29_s27 = sadd.s32 1, %s4047_s27  }
 0xa0d   : > { %p26_p6 = scmp.ge.s32.totalorder %s29_s27, 4  }
 0xa0f   :  { %28 = sbr.rel (!%p26_p6) target bundleno = 4 (0x4), region = 130 }

</bundles_post_ra>
